<compile_context>
chip_gen: v5e
topology: v5e:2x2
jax: 0.10.0
libtpu: 0.0.40
codegen_flags: <defaults>
</compile_context>

<pallas_src>
import math
import numpy as np

import jax
import jax.numpy as jnp
from jax.experimental import pallas as pl
from jax.experimental.pallas import tpu as pltpu

# ----- constants mirroring MetaBaseline.__init__ -----
PLANES = 640                 # encoder output channels ("dimension")
DCT_H = DCT_W = 5            # c2wh[640] = 5
REDUCTION = 16
FREQ_SEL = "top16"
TEMP_INIT = 10.0             # nn.Parameter(torch.tensor(10.0))

# synthetic small image / encoder geometry (encoder output is (N, 640, 5, 5))
IMG_C, IMG_H, IMG_W = 3, 20, 20
PATCH = 4
FH, FW = IMG_H // PATCH, IMG_W // PATCH          # 5 x 5
HW = FH * FW                                     # 25
PATCH_DIM = IMG_C * PATCH * PATCH                # 48
CR = PLANES // REDUCTION                         # 40

BLOCK_N = 8                  # images per grid step (must be a multiple of 8;
                             # raise to 64/128 for large batches)


# ---------------------------------------------------------------------------
# FcaNet DCT filter construction (faithful to MultiSpectralDCTLayer)
# ---------------------------------------------------------------------------
def _get_freq_indices(method=FREQ_SEL):
    num_freq = int(method[3:])
    all_top_x = [0, 0, 6, 0, 0, 1, 1, 4, 5, 1, 3, 0, 0, 0, 3, 2,
                 4, 6, 3, 5, 5, 2, 6, 5, 5, 3, 3, 4, 2, 2, 6, 1]
    all_top_y = [0, 1, 0, 5, 2, 0, 2, 0, 0, 6, 0, 4, 6, 3, 5, 2,
                 6, 3, 3, 3, 5, 1, 1, 2, 4, 2, 1, 1, 3, 0, 5, 3]
    return all_top_x[:num_freq], all_top_y[:num_freq]


def _build_filter(pos, freq, POS):
    result = math.cos(math.pi * freq * (pos + 0.5) / POS) / math.sqrt(POS)
    return result if freq == 0 else result * math.sqrt(2)


def make_dct_weight(channel=PLANES, dct_h=DCT_H, dct_w=DCT_W, method=FREQ_SEL):
    mx, my = _get_freq_indices(method)
    mx = [x * (dct_h // 7) for x in mx]      # dct_h // 7 == 0 for 5x5 maps
    my = [y * (dct_w // 7) for y in my]
    w = np.zeros((channel, dct_h, dct_w), np.float32)
    c_part = channel // len(mx)
    for i, (u_x, v_y) in enumerate(zip(mx, my)):
        for tx in range(dct_h):
            for ty in range(dct_w):
                w[i * c_part:(i + 1) * c_part, tx, ty] = (
                    _build_filter(tx, u_x, dct_h) * _build_filter(ty, v_y, dct_w))
    # (C, H, W) -> (H*W, C) to match the channels-last kernel layout
    return jnp.asarray(w.transpose(1, 2, 0).reshape(dct_h * dct_w, channel))


# ---------------------------------------------------------------------------
# Kernel 1: fused encoder + MultiSpectralAttention + spatial-mean pooling
#   feat   = relu(p @ W_enc + b)                      (per pixel-patch)
#   y[b]   = sum_s feat[b, s, :] * dct[s, :]          (DCT spectral pooling)
#   scale  = sigmoid(relu(y @ W1) @ W2)               (SE-style FC, no bias)
#   out[b] = scale * mean_s feat[b, s, :]             (== mean over H*W of x*scale)
# ---------------------------------------------------------------------------
def _fused_encode_pool_kernel(p_ref, w_ref, b_ref, dct_ref, r_ref,
                              w1_ref, w2_ref, o_ref):
    # p_ref   : (B*HW, PATCH_DIM) bf16    patch pixels for B images
    # w_ref   : (PATCH_DIM, C)    bf16    patch-embed weight
    # b_ref   : (1, C)            f32     patch-embed bias
    # dct_ref : (B*HW, C)         f32     DCT filter tiled over the B images
    # r_ref   : (B, B*HW)         f32     0/1 per-image row-sum indicator matrix
    # w1_ref  : (C, C/r)          bf16    SE FC1 (no bias)
    # w2_ref  : (C/r, C)          bf16    SE FC2 (no bias)
    # o_ref   : (B, C)            f32     pooled, gated features

    # synthetic patch-embed encoder (conv-as-matmul) + bias + ReLU, f32 accumulation
    feat = jnp.maximum(
        jnp.dot(p_ref[...], w_ref[...], preferred_element_type=jnp.float32)
        + b_ref[...], 0.0)                                             # (B*HW, C) f32

    # per-image reductions via 0/1 indicator matmuls (keeps everything 2-D / MXU)
    y = jnp.dot(r_ref[...], feat * dct_ref[...],
                preferred_element_type=jnp.float32)                    # (B, C) DCT pool
    mean = jnp.dot(r_ref[...], feat,
                   preferred_element_type=jnp.float32) * (1.0 / HW)    # (B, C) spatial mean

    # SE excitation: FC1 -> ReLU -> FC2 -> sigmoid (bf16 matmuls, f32 accum / sigmoid)
    h = jnp.maximum(
        jnp.dot(y.astype(jnp.bfloat16), w1_ref[...],
                preferred_element_type=jnp.float32), 0.0)              # (B, C/r)
    s = jax.nn.sigmoid(
        jnp.dot(h.astype(jnp.bfloat16), w2_ref[...],
                preferred_element_type=jnp.float32))                   # (B, C)

    # channel gate fused with the global spatial mean
    o_ref[...] = s * mean


def encode_and_pool(x_nchw, params, block_n=BLOCK_N):
    """(N, 3, 20, 20) -> (N, 640) pooled features. Encoder + attention fused."""
    n = x_nchw.shape[0]
    n_pad = -(-n // block_n) * block_n
    bhw = block_n * HW

    # NCHW -> non-overlapping patches -> (N_pad*HW, PATCH_DIM)   (glue, plain JAX)
    p = x_nchw.reshape(n, IMG_C, FH, PATCH, FW, PATCH)
    p = p.transpose(0, 2, 4, 1, 3, 5).reshape(n, HW, PATCH_DIM)
    if n_pad != n:
        p = jnp.pad(p, ((0, n_pad - n), (0, 0), (0, 0)))
    p = p.reshape(n_pad * HW, PATCH_DIM).astype(jnp.bfloat16)

    # constants shared by every grid step
    dct_tiled = jnp.tile(params["dct_w"], (block_n, 1))                  # (B*HW, C)
    r_sum = jnp.asarray(np.kron(np.eye(block_n, dtype=np.float32),
                                np.ones((1, HW), np.float32)))           # (B, B*HW)

    n_steps = n_pad // block_n
    flops = int(2 * n_pad * HW * PATCH_DIM * PLANES       # encoder matmul
                + 4 * n_pad * bhw * PLANES                # two indicator reductions
                + 4 * n_pad * PLANES * CR)                # FC1 + FC2
    bytes_accessed = int(n_pad * HW * PATCH_DIM * 2 + n_pad * PLANES * 4
                         + n_steps * (bhw * PLANES * 4 + block_n * bhw * 4
                                      + PATCH_DIM * PLANES * 2 + 2 * PLANES * CR * 2))

    out = pl.pallas_call(
        _fused_encode_pool_kernel,
        grid=(n_steps,),
        out_shape=jax.ShapeDtypeStruct((n_pad, PLANES), jnp.float32),
        in_specs=[
            pl.BlockSpec((bhw, PATCH_DIM), lambda i: (i, 0)),
            pl.BlockSpec((PATCH_DIM, PLANES), lambda i: (0, 0)),
            pl.BlockSpec((1, PLANES), lambda i: (0, 0)),
            pl.BlockSpec((bhw, PLANES), lambda i: (0, 0)),
            pl.BlockSpec((block_n, bhw), lambda i: (0, 0)),
            pl.BlockSpec((PLANES, CR), lambda i: (0, 0)),
            pl.BlockSpec((CR, PLANES), lambda i: (0, 0)),
        ],
        out_specs=pl.BlockSpec((block_n, PLANES), lambda i: (i, 0)),
        compiler_params=pltpu.CompilerParams(dimension_semantics=("parallel",)),
        cost_estimate=pl.CostEstimate(flops=flops,
                                      transcendentals=int(n_pad * PLANES),
                                      bytes_accessed=bytes_accessed),
    )(p,
      params["w_enc"].astype(jnp.bfloat16),
      params["b_enc"],
      dct_tiled,
      r_sum,
      params["w_fc1"].astype(jnp.bfloat16),
      params["w_fc2"].astype(jnp.bfloat16))
    return out[:n]


# ---------------------------------------------------------------------------
# Kernel 2: prototypes (mean over shots), L2-normalize (rsqrt), cosine logits * temp
#           -- single step over all episodes (episode count is tiny)
# ---------------------------------------------------------------------------
def _logits_kernel(temp_ref, shot_ref, query_ref, o_ref):
    # shot_ref : (ep, way, shot, C)   query_ref : (ep, Q, C)   o_ref : (ep, Q, way)
    proto = jnp.mean(shot_ref[...], axis=2)                              # (ep, way, C)
    proto = proto * jax.lax.rsqrt(
        jnp.maximum(jnp.sum(proto * proto, axis=-1, keepdims=True), 1e-24))
    q = query_ref[...]
    q = q * jax.lax.rsqrt(
        jnp.maximum(jnp.sum(q * q, axis=-1, keepdims=True), 1e-24))
    dots = jnp.einsum("eqc,ewc->eqw", q, proto,
                      preferred_element_type=jnp.float32)                # (ep, Q, way)
    o_ref[...] = dots * temp_ref[0]


def compute_logits_pallas(shot_pool, query_pool, temp):
    ep, way, shot, c = shot_pool.shape
    q = query_pool.shape[1]
    return pl.pallas_call(
        _logits_kernel,
        out_shape=jax.ShapeDtypeStruct((ep, q, way), jnp.float32),
        in_specs=[
            pl.BlockSpec(memory_space=pltpu.MemorySpace.SMEM),
            pl.BlockSpec(memory_space=pltpu.MemorySpace.VMEM),
            pl.BlockSpec(memory_space=pltpu.MemorySpace.VMEM),
        ],
        out_specs=pl.BlockSpec(memory_space=pltpu.MemorySpace.VMEM),
    )(temp, shot_pool, query_pool)


# ---------------------------------------------------------------------------
# Full MetaBaseline forward (method='cos')
# ---------------------------------------------------------------------------
def meta_baseline_forward(x_shot, x_query, params):
    shot_shape = x_shot.shape[:-3]       # (ep, way, shot)
    query_shape = x_query.shape[:-3]     # (ep, Q)
    img_shape = x_shot.shape[-3:]
    xs = x_shot.reshape((-1,) + img_shape)
    xq = x_query.reshape((-1,) + img_shape)
    x_tot = jnp.concatenate([xs, xq], axis=0)

    pooled = encode_and_pool(x_tot, params)                              # (N, C) fused

    ns = xs.shape[0]
    shot_pool = pooled[:ns].reshape(shot_shape + (PLANES,))              # (ep, way, shot, C)
    query_pool = pooled[ns:].reshape(query_shape + (PLANES,))            # (ep, Q, C)
    return compute_logits_pallas(shot_pool, query_pool, params["temp"])  # (ep, Q, way)


# pure-JAX f32 reference (same math, no Pallas) for sanity checking
def meta_baseline_reference(x_shot, x_query, params):
    shot_shape = x_shot.shape[:-3]
    query_shape = x_query.shape[:-3]
    img_shape = x_shot.shape[-3:]
    xs = x_shot.reshape((-1,) + img_shape)
    xq = x_query.reshape((-1,) + img_shape)
    x = jnp.concatenate([xs, xq], axis=0)
    n = x.shape[0]
    p = x.reshape(n, IMG_C, FH, PATCH, FW, PATCH).transpose(0, 2, 4, 1, 3, 5)
    p = p.reshape(n * HW, PATCH_DIM)
    feat = jnp.maximum(p @ params["w_enc"] + params["b_enc"], 0.0).reshape(n, HW, PLANES)
    y = jnp.sum(feat * params["dct_w"][None], axis=1)
    s = jax.nn.sigmoid(jnp.maximum(y @ params["w_fc1"], 0.0) @ params["w_fc2"])
    pooled = s * jnp.mean(feat, axis=1)
    ns = xs.shape[0]
    shot_pool = pooled[:ns].reshape(shot_shape + (PLANES,))
    query_pool = pooled[ns:].reshape(query_shape + (PLANES,))
    proto = jnp.mean(shot_pool, axis=-2)
    proto = proto / jnp.maximum(jnp.linalg.norm(proto, axis=-1, keepdims=True), 1e-12)
    qn = query_pool / jnp.maximum(jnp.linalg.norm(query_pool, axis=-1, keepdims=True), 1e-12)
    return jnp.einsum("eqc,ewc->eqw", qn, proto) * params["temp"][0]


if __name__ == "__main__":
    key = jax.random.PRNGKey(0)
    k1, k2, k3, k4, k5, k6 = jax.random.split(key, 6)

    params = {
        # synthetic patch-embed "encoder" weights
        "w_enc": 0.05 * jax.random.normal(k1, (PATCH_DIM, PLANES), jnp.float32),
        "b_enc": 0.05 * jax.random.normal(k2, (1, PLANES), jnp.float32),
        # MultiSpectralAttentionLayer fc: Linear(640,40,bias=False) / Linear(40,640,bias=False)
        "w_fc1": 0.05 * jax.random.normal(k3, (PLANES, CR), jnp.float32),
        "w_fc2": 0.05 * jax.random.normal(k4, (CR, PLANES), jnp.float32),
        "dct_w": make_dct_weight(),                          # fixed DCT buffer
        "temp": jnp.array([TEMP_INIT], dtype=jnp.float32),   # learnable temperature (init 10.0)
    }

    # episodes=2, ways=2, shots=2, queries=3 -> x_shot (2,2,2,3,20,20), x_query (2,3,3,20,20)
    x_shot = jax.random.normal(k5, (2, 2, 2, IMG_C, IMG_H, IMG_W), jnp.float32)
    x_query = jax.random.normal(k6, (2, 3, IMG_C, IMG_H, IMG_W), jnp.float32)

    logits = meta_baseline_forward(x_shot, x_query, params)
    logits = jax.block_until_ready(logits)

    ref = jax.block_until_ready(meta_baseline_reference(x_shot, x_query, params))
    assert logits.shape == (2, 3, 2), logits.shape
    assert bool(jnp.all(jnp.isfinite(logits)))
    # kernel path uses bf16 matmul operands (f32 accumulation); reference is pure f32
    assert np.allclose(np.asarray(logits), np.asarray(ref), atol=1.5e-1, rtol=5e-2), (
        np.max(np.abs(np.asarray(logits) - np.asarray(ref))))

    print("KERNEL_OK")
</pallas_src>

<mosaic_0001>
module attributes {stable_mosaic.version = 11 : i64} {
  func.func @_fused_encode_pool_kernel(%arg0: i32, %arg1: memref<200x48xbf16, #tpu.memory_space<vmem>>, %arg2: memref<48x640xbf16, #tpu.memory_space<vmem>>, %arg3: memref<1x640xf32, #tpu.memory_space<vmem>>, %arg4: memref<200x640xf32, #tpu.memory_space<vmem>>, %arg5: memref<8x200xf32, #tpu.memory_space<vmem>>, %arg6: memref<640x40xbf16, #tpu.memory_space<vmem>>, %arg7: memref<40x640xbf16, #tpu.memory_space<vmem>>, %arg8: memref<8x640xf32, #tpu.memory_space<vmem>>) attributes {dimension_semantics = [#tpu.dimension_semantics<parallel>], iteration_bounds = array<i64: 2>, scalar_prefetch = 0 : i64, scratch_operands = 0 : i64, tpu.core_type = #tpu.core_type<tc>, window_params = [{transform_indices = @transform_0, window_bounds = array<i64: 200, 48>}, {pipeline_mode = #tpu.pipeline_mode<synchronous>, transform_indices = @transform_1, window_bounds = array<i64: 48, 640>}, {pipeline_mode = #tpu.pipeline_mode<synchronous>, transform_indices = @transform_2, window_bounds = array<i64: 1, 640>}, {pipeline_mode = #tpu.pipeline_mode<synchronous>, transform_indices = @transform_3, window_bounds = array<i64: 200, 640>}, {pipeline_mode = #tpu.pipeline_mode<synchronous>, transform_indices = @transform_4, window_bounds = array<i64: 8, 200>}, {pipeline_mode = #tpu.pipeline_mode<synchronous>, transform_indices = @transform_5, window_bounds = array<i64: 640, 40>}, {pipeline_mode = #tpu.pipeline_mode<synchronous>, transform_indices = @transform_6, window_bounds = array<i64: 40, 640>}, {transform_indices = @transform_7, window_bounds = array<i64: 8, 640>}]} {
    %c0 = arith.constant 0 : index
    %c0_0 = arith.constant 0 : index
    %0 = vector.load %arg1[%c0, %c0_0] : memref<200x48xbf16, #tpu.memory_space<vmem>>, vector<200x48xbf16>
    %c0_1 = arith.constant 0 : index
    %c0_2 = arith.constant 0 : index
    %1 = vector.load %arg2[%c0_1, %c0_2] : memref<48x640xbf16, #tpu.memory_space<vmem>>, vector<48x640xbf16>
    %cst = arith.constant dense<0.000000e+00> : vector<200x640xf32>
    %2 = tpu.matmul %0, %1, %cst {dimension_numbers = #tpu.dot_dimension_numbers<[1], [0], [0], [1], [0, 0, 1, 1], [], []>} : vector<200x48xbf16>, vector<48x640xbf16>, vector<200x640xf32> -> vector<200x640xf32>
    %c0_3 = arith.constant 0 : index
    %c0_4 = arith.constant 0 : index
    %3 = vector.load %arg3[%c0_3, %c0_4] : memref<1x640xf32, #tpu.memory_space<vmem>>, vector<1x640xf32>
    %4 = vector.broadcast %3 : vector<1x640xf32> to vector<200x640xf32>
    %5 = arith.addf %2, %4 : vector<200x640xf32>
    %cst_5 = arith.constant 0.000000e+00 : f32
    %6 = vector.broadcast %cst_5 : f32 to vector<200x640xf32>
    %7 = arith.maximumf %5, %6 : vector<200x640xf32>
    %c0_6 = arith.constant 0 : index
    %c0_7 = arith.constant 0 : index
    %8 = vector.load %arg5[%c0_6, %c0_7] : memref<8x200xf32, #tpu.memory_space<vmem>>, vector<8x200xf32>
    %c0_8 = arith.constant 0 : index
    %c0_9 = arith.constant 0 : index
    %9 = vector.load %arg4[%c0_8, %c0_9] : memref<200x640xf32, #tpu.memory_space<vmem>>, vector<200x640xf32>
    %10 = arith.mulf %7, %9 : vector<200x640xf32>
    %cst_10 = arith.constant dense<0.000000e+00> : vector<8x640xf32>
    %11 = tpu.matmul %8, %10, %cst_10 {dimension_numbers = #tpu.dot_dimension_numbers<[1], [0], [0], [1], [0, 0, 1, 1], [], []>} : vector<8x200xf32>, vector<200x640xf32>, vector<8x640xf32> -> vector<8x640xf32>
    %c0_11 = arith.constant 0 : index
    %c0_12 = arith.constant 0 : index
    %12 = vector.load %arg5[%c0_11, %c0_12] : memref<8x200xf32, #tpu.memory_space<vmem>>, vector<8x200xf32>
    %cst_13 = arith.constant dense<0.000000e+00> : vector<8x640xf32>
    %13 = tpu.matmul %12, %7, %cst_13 {dimension_numbers = #tpu.dot_dimension_numbers<[1], [0], [0], [1], [0, 0, 1, 1], [], []>} : vector<8x200xf32>, vector<200x640xf32>, vector<8x640xf32> -> vector<8x640xf32>
    %cst_14 = arith.constant 4.000000e-02 : f32
    %14 = vector.broadcast %cst_14 : f32 to vector<8x640xf32>
    %15 = arith.mulf %13, %14 : vector<8x640xf32>
    %16 = arith.truncf %11 : vector<8x640xf32> to vector<8x640xbf16>
    %c0_15 = arith.constant 0 : index
    %c0_16 = arith.constant 0 : index
    %17 = vector.load %arg6[%c0_15, %c0_16] : memref<640x40xbf16, #tpu.memory_space<vmem>>, vector<640x40xbf16>
    %cst_17 = arith.constant dense<0.000000e+00> : vector<8x40xf32>
    %18 = tpu.matmul %16, %17, %cst_17 {dimension_numbers = #tpu.dot_dimension_numbers<[1], [0], [0], [1], [0, 0, 1, 1], [], []>} : vector<8x640xbf16>, vector<640x40xbf16>, vector<8x40xf32> -> vector<8x40xf32>
    %cst_18 = arith.constant 0.000000e+00 : f32
    %19 = vector.broadcast %cst_18 : f32 to vector<8x40xf32>
    %20 = arith.maximumf %18, %19 : vector<8x40xf32>
    %21 = arith.truncf %20 : vector<8x40xf32> to vector<8x40xbf16>
    %c0_19 = arith.constant 0 : index
    %c0_20 = arith.constant 0 : index
    %22 = vector.load %arg7[%c0_19, %c0_20] : memref<40x640xbf16, #tpu.memory_space<vmem>>, vector<40x640xbf16>
    %cst_21 = arith.constant dense<0.000000e+00> : vector<8x640xf32>
    %23 = tpu.matmul %21, %22, %cst_21 {dimension_numbers = #tpu.dot_dimension_numbers<[1], [0], [0], [1], [0, 0, 1, 1], [], []>} : vector<8x40xbf16>, vector<40x640xbf16>, vector<8x640xf32> -> vector<8x640xf32>
    %24 = arith.negf %23 : vector<8x640xf32>
    %25 = math.exp %24 : vector<8x640xf32>
    %cst_22 = arith.constant 1.000000e+00 : f32
    %26 = vector.broadcast %cst_22 : f32 to vector<8x640xf32>
    %27 = arith.addf %26, %25 : vector<8x640xf32>
    %28 = arith.divf %26, %27 : vector<8x640xf32>
    %29 = arith.mulf %28, %15 : vector<8x640xf32>
    %c0_23 = arith.constant 0 : index
    %c0_24 = arith.constant 0 : index
    %30 = vector.load %arg8[%c0_23, %c0_24] : memref<8x640xf32, #tpu.memory_space<vmem>>, vector<8x640xf32>
    tpu.vector_store %arg8[%c0_23, %c0_24], %29 {strides = array<i32>} : memref<8x640xf32, #tpu.memory_space<vmem>>, vector<8x640xf32>,
    return
  }
  func.func @transform_0(%arg0: i32) -> (i32, i32) {
    %c0_i32 = arith.constant 0 : i32
    %c0_i32_0 = arith.constant 0 : i32
    return %arg0, %c0_i32 : i32, i32
  }
  func.func @transform_1(%arg0: i32) -> (i32, i32) {
    %c0_i32 = arith.constant 0 : i32
    %c0_i32_0 = arith.constant 0 : i32
    %c0_i32_1 = arith.constant 0 : i32
    return %c0_i32, %c0_i32_0 : i32, i32
  }
  func.func @transform_2(%arg0: i32) -> (i32, i32) {
    %c0_i32 = arith.constant 0 : i32
    %c0_i32_0 = arith.constant 0 : i32
    %c0_i32_1 = arith.constant 0 : i32
    return %c0_i32, %c0_i32_0 : i32, i32
  }
  func.func @transform_3(%arg0: i32) -> (i32, i32) {
    %c0_i32 = arith.constant 0 : i32
    %c0_i32_0 = arith.constant 0 : i32
    %c0_i32_1 = arith.constant 0 : i32
    return %c0_i32, %c0_i32_0 : i32, i32
  }
  func.func @transform_4(%arg0: i32) -> (i32, i32) {
    %c0_i32 = arith.constant 0 : i32
    %c0_i32_0 = arith.constant 0 : i32
    %c0_i32_1 = arith.constant 0 : i32
    return %c0_i32, %c0_i32_0 : i32, i32
  }
  func.func @transform_5(%arg0: i32) -> (i32, i32) {
    %c0_i32 = arith.constant 0 : i32
    %c0_i32_0 = arith.constant 0 : i32
    %c0_i32_1 = arith.constant 0 : i32
    return %c0_i32, %c0_i32_0 : i32, i32
  }
  func.func @transform_6(%arg0: i32) -> (i32, i32) {
    %c0_i32 = arith.constant 0 : i32
    %c0_i32_0 = arith.constant 0 : i32
    %c0_i32_1 = arith.constant 0 : i32
    return %c0_i32, %c0_i32_0 : i32, i32
  }
  func.func @transform_7(%arg0: i32) -> (i32, i32) {
    %c0_i32 = arith.constant 0 : i32
    %c0_i32_0 = arith.constant 0 : i32
    return %arg0, %c0_i32 : i32, i32
  }
}

</mosaic_0001>

<bundles_post_ra>
// kernel: tpu_custom_call.1
= control target key start
LH: loop header
LB: loop body
LE: loop exit
PB: predicated region body
PF: predicated region fallthrough
CT: control target
= control target key end

     0   :  { %12 = vsyncpa [#allocation3], 0  ;;  %s4927_s0 = inlined_call_operand.vmem [shape: bf16[400,48], index: 0, kind: input, shape index: {}]   ;;  %s4928_s1 = inlined_call_operand.vmem [shape: bf16[48,640], index: 1, kind: input, shape index: {}]   ;;  %s4929_s2 = inlined_call_operand.vmem [shape: f32[1,640], index: 2, kind: input, shape index: {}]   ;;  %s4930_s3 = inlined_call_operand.hbm [shape: f32[200,640], index: 3, kind: input, shape index: {}]   ;;  %s4931_s4 = inlined_call_operand.vmem [shape: f32[8,200], index: 4, kind: input, shape index: {}]   ;;  %s4932_s5 = inlined_call_operand.vmem [shape: bf16[640,40], index: 5, kind: input, shape index: {}]   ;;  %s4933_s6 = inlined_call_operand.vmem [shape: bf16[40,640], index: 6, kind: input, shape index: {}]   ;;  %s4934_s7 = inlined_call_operand.hbm [shape: f32[16,640], index: 7, kind: output, shape index: {}]  }
   0x1   :  { %13 = vsyncpa [#allocation4], 0 }
   0x2   :  { %15 = vsyncpa [#allocation4 + $0x1], 0  ;;  %s3134_s24 = smov 0   ;;  %s3136_s25 = smov 0  }
   0x3   :  { %s3138_s26 = smov 0   ;;  %s3140_s27 = smov 0  }
   0x4 LB: > { %s3155_s28 = sadd.s32 4294967295, %s3089_s27   ;;  %s2434_s29 = sadd.s32 4294967294, %s3089_s27   ;;  %s3089_s27 = sphi %s3140_s27, %s5334_s27   ;;  %s3085_s26 = sphi %s3138_s26, %s5333_s26   ;;  %s3081_s25 = sphi %s3136_s25, %s5332_s25   ;;  %s3077_s24 = sphi %s3134_s24, %s5331_s24  }
   0x5   : > { %s3159_s30 = sadd.s32 1, %s3089_s27   ;;  %s180_s8 = sadd.s32 1, %s3085_s26 }
   0x6   : > { %s177_s9 = ssub.s32 %s3089_s27, %s3159_s30  ;;  %p190_p0 = scmp.ne.s32.totalorder %s3085_s26, %s3081_s25 }
   0x7   : > { %p178_p1 = scmp.eq.s32.totalorder %s177_s9, 0  ;;  %p191_p2 = scmp.eq.s32.totalorder %s3155_s28, 1 }
   0x8   : > { %p196_p3 = scmp.ne.s32.totalorder %s3081_s25, %s3077_s24  ;;  %p197_p4 = scmp.eq.s32.totalorder %s2434_s29, 1 }
   0x9   : > { %s3170_s10 = scalar_select %p178_p1, %s3085_s26, %s180_s8  }
   0xa   : > { %p3172_p5 = por %p191_p2, %p190_p0  ;;  %p3176_p6 = por %p197_p4, %p196_p3 }
   0xb   : > { %p2435_p7 = scmp.ge.s32.totalorder %s3089_s27, 1  ;;  %p204_p8 = scmp.lt.s32.totalorder %s3089_s27, 3 }
   0xc   : > { %p2930_p9 = scmp.eq.s32.totalorder %s3155_s28, 0  ;;  %s221_s15 = sshll.u32 %s4930_s3, 4  ;;  %s222_s15 = int_to_ptr.hbm [resolvable:$true] %s221_s15 }
   0xd   : > { %p205_p10 = pnand %p2435_p7, %p204_p8  ;;  %s3091_s16 = smov [#allocation2]  }
   0xe   : > { %s223_s17 = sshll.u32 %s3091_s16, 4  ;;  %s3092_s18 = smov 640   ;;  %s224_s17 = int_to_ptr.vmem [resolvable:$true] %s223_s17 }
   0xf   : > { %p2922_p11 = pneg %p205_p10  ;;  %s3093_s19 = smov 40  }
  0x10   : > { %257 = sbr.rel (%p205_p10) target bundleno = 1035 (0x40b), region = 48 }
  0x11   : > { %p2923_p12 = pnand %p2930_p9, %p2922_p11 }
  0x13   : > { %2925 = dma.hbm_to_vmem [thread:$0]  (!%p2923_p12), %s222_s15, 16000, %s224_s17, [#allocation3], %s3092_s18, %s3092_s18, %s3093_s19  }
  0x15   : > { %3068 = dma.done.wait (%p2930_p9), [#allocation3], 16000  }
  0x16   : > { %3070 = vsyncadd (%p2930_p9), [#allocation3], 4294951296  ;;  %s290_s20 = smul.u32 25, %s3155_s28  ;;  %v2531_v0 = vld [vmem:[%s4928_s1 + $0x50] sm:$0xf]  ;;  %vm493_vm0 = vcmask 392192  }
  0x17   : > { %v2861_v1 = vld [vmem:[%s4928_s1 + $0x60] sm:$0xf0]  ;;  %v2859_v2 = vld [vmem:[%s4928_s1 + $0x54] sm:$0xf]  ;;  %v2533_v4 = vld [vmem:[%s4928_s1 + $0x64] sm:$0xf0] }
  0x18   : > { %p291_p13 = scmp.lt.s32.totalorder %s290_s20, 49  ;;  %v2532_v3 = vor.u32 %v2861_v1, %v2531_v0  ;;  %v2511_v5 = vld [vmem:[%s4928_s1 + $0x28] sm:$0xf]  ;;  %v2856_v6 = vld [vmem:[%s4928_s1 + $0x38] sm:$0xf0]  ;;  %v2536_v7 = vor.u32 %v2859_v2, %v2533_v4  ;;  %vm1275_vm1 = vcmask 588800  }
  0x19   : > { %v2854_v8 = vld [vmem:[%s4928_s1 + $0x2c] sm:$0xf]  ;;  %v2513_v9 = vld [vmem:[%s4928_s1 + $0x3c] sm:$0xf0]  ;;  %v2512_v10 = vor.u32 %v2856_v6, %v2511_v5  ;;  %v2851_v13 = vld [vmem:[%s4928_s1 + $0x10] sm:$0xf0] }
  0x1a   : > { %s5336_s20 = smov (!%p291_p13, %s290_s20), 49  ;;  %538 = vmatpush.bf16.msra.mxu0 %v2532_v3  ;;  %611 = vmatpush.bf16.msra.mxu1 %v2536_v7  ;;  %v2516_v11 = vor.u32 %v2854_v8, %v2513_v9  ;;  %v2491_v12 = vld [vmem:[%s4928_s1] sm:$0xf]  ;;  %v2849_v14 = vld [vmem:[%s4928_s1 + $0x4] sm:$0xf]  ;;  %vm2160_vm2 = vcmask 1043456  }
  0x1b   : > { %s2440_s29 = sshll.u32 %s5336_s20, 2  ;;  %v2493_v15 = vld [vmem:[%s4928_s1 + $0x14] sm:$0xf0]  ;;  %v2547_v16 = vld [vmem:[%s4928_s1 + $0x60] sm:$0xf]  ;;  %v2492_v18 = vor.u32 %v2851_v13, %v2491_v12  ;;  %vm2156_vm3 = vcmask 326656  }
  0x1c   : > { %v2863_v17 = vld [vmem:[%s4928_s1 + $0x70] sm:$0xf0]  ;;  %s3238_s9 = scalar_lea.vmem %s4927_s0, %s2440_s29  ;;  %v2496_v19 = vor.u32 %v2849_v14, %v2493_v15  ;;  %v2539_v24 = vld [vmem:[%s4928_s1 + $0x58] sm:$0xf]  ;;  %v2862_v25 = vld [vmem:[%s4928_s1 + $0x68] sm:$0xf0] }
  0x1d   : > { %v2548_v20 = vor.u32 %v2863_v17, %v2547_v16  ;;  %v3241_v21 = vld [vmem:[%s3238_s9] sm:$0xff]  ;;  %v3248_v22 = vld [vmem:[%s3238_s9 + $0x8] sm:$0xff]  ;;  %v3255_v23 = vld [vmem:[%s3238_s9 + $0x10] sm:$0xff]  ;;  %v2540_v27 = vor.u32 %v2862_v25, %v2539_v24  ;;  %s287_s16 = sand.u32 1, %s3081_s25   ;;  %s2915_s19 = smul.u32 40, %s3155_s28 }
  0x1e   : > { %539 = vmatpush.bf16.msra.mxu0 %v2512_v10  ;;  %612 = vmatpush.bf16.msra.mxu1 %v2516_v11  ;;  %v2860_v26 = vld [vmem:[%s4928_s1 + $0x5c] sm:$0xf]  ;;  %v2541_v28 = vld [vmem:[%s4928_s1 + $0x6c] sm:$0xf0]  ;;  %v2857_v30 = vld [vmem:[%s4928_s1 + $0x40] sm:$0xf0] }
  0x1f   : > { %v2519_v29 = vld [vmem:[%s4928_s1 + $0x30] sm:$0xf]  ;;  %v2544_v31 = vor.u32 %v2860_v26, %v2541_v28  ;;  %v2855_v32 = vld [vmem:[%s4928_s1 + $0x34] sm:$0xf]  ;;  %v2521_v33 = vld [vmem:[%s4928_s1 + $0x44] sm:$0xf0]  ;;  %684 = vmatpush.bf16.msra.mxu2 %v2540_v27  ;;  %s2358_s22 = scalar_lea.hbm %s4934_s7, %s2915_s19 }
  0x20   : > { %v2520_v34 = vor.u32 %v2857_v30, %v2519_v29  ;;  %v2524_v35 = vor.u32 %v2855_v32, %v2521_v33  ;;  %v3286_v36 = vld [vmem:[%s3238_s9 + $0x18] sm:$0xff]  ;;  %v2499_v37 = vld [vmem:[%s4928_s1 + $0x8] sm:$0xf]  ;;  %v2850_v39 = vld [vmem:[%s4928_s1 + $0xc] sm:$0xf]  ;;  %s4873_s17 = smul.u32 40, %s287_s16 }
  0x21   : > { %757 = vmatpush.bf16.msra.mxu3 %v2544_v31  ;;  %v2852_v38 = vld [vmem:[%s4928_s1 + $0x18] sm:$0xf0]  ;;  %v2501_v41 = vld [vmem:[%s4928_s1 + $0x1c] sm:$0xf0]  ;;  %v2527_v43 = vld [vmem:[%s4928_s1 + $0x38] sm:$0xf] }
  0x22   : > { %540 = vmatpush.bf16.msra.mxu0 %v2492_v18  ;;  %613 = vmatpush.bf16.msra.mxu1 %v2496_v19  ;;  %v2500_v40 = vor.u32 %v2852_v38, %v2499_v37  ;;  %v2504_v42 = vor.u32 %v2850_v39, %v2501_v41  ;;  %v2858_v44 = vld [vmem:[%s4928_s1 + $0x48] sm:$0xf0]  ;;  %v3315_v46 = vld [vmem:[%s3238_s9 + $0x20] sm:$0xff]  ;;  %v3337_v48 = vld [vmem:[%s3238_s9 + $0x30] sm:$0xff]  ;;  %s4881_s18 = scalar_lea.vmem [#allocation5], %s4873_s17  ;;  %s2362_s23 = sshll.u32 %s2358_s22, 4  ;;  %s2363_s23 = int_to_ptr.hbm [resolvable:$true] %s2362_s23 }
  0x23   : > { %685 = vmatpush.bf16.msra.mxu2 %v2520_v34  ;;  %v2528_v45 = vor.u32 %v2858_v44, %v2527_v43  ;;  %v3326_v47 = vld [vmem:[%s3238_s9 + $0x28] sm:$0xff]  ;;  %v3348_v49 = vld [vmem:[%s3238_s9 + $0x38] sm:$0xff]  ;;  %v2507_v50 = vld [vmem:[%s4928_s1 + $0x10] sm:$0xf]  ;;  %s2360_s28 = sshll.u32 %s4881_s18, 4  ;;  %s3037_s8 = sshra.s32 %s2363_s23, 4  ;;  %s2361_s28 = int_to_ptr.vmem [resolvable:$true] %s2360_s28  ;;  %s3038_s8 = int_to_ptr.hbm [resolvable:$true] %s3037_s8 }
  0x24   : > { %v2853_v51 = vld [vmem:[%s4928_s1 + $0x20] sm:$0xf0]  ;;  %v3384_v58 = vld [vmem:[%s3238_s9 + $0x48] sm:$0xff]  ;;  %v2847_v63 = vld [vmem:[%s3238_s9 + $0x50] sm:$0xff]  ;;  %s3039_s29 = scalar_lea.hbm %s3038_s8, 40  ;;  %s3043_s15 = scalar_lea.hbm %s4934_s7, 80 }
  0x25   : > { %2549 = vmatmul.msk.bf16.vlgmr.msra.gmra.mxu0 %vm493_vm0, %v3241_v21  ;;  %2562 = vmatmul.msk.bf16.vlgmr.msra.gmra.mxu1 %vm493_vm0, %v3241_v21  ;;  %v2508_v52 = vor.u32 %v2853_v51, %v2507_v50  ;;  %v3365_v53 = vld [vmem:[%s3238_s9 + $0x40] sm:$0xff]  ;;  %5015 = vst [vmem:[#allocation8_spill] sm:$0xff] %v3384_v58  ;;  %v2848_v4 = vld [vmem:[%s3238_s9 + $0x58] sm:$0xff]  ;;  %p3040_p0 = scmp.ne.s32.totalorder %s3038_s8, %s3039_s29  ;;  %p3044_p3 = scmp.lt.s32.totalorder %s3038_s8, %s4934_s7 }
  0x26   : > { %830 = vmatpush.bf16.msrb.mxu0 %v2548_v20  ;;  %758 = vmatpush.bf16.msra.mxu3 %v2524_v35  ;;  %v321_v8 = vld [vmem:[%s3238_s9 + $0x60] sm:$0xf]  ;;  %p3045_p4 = scmp.lt.s32.totalorder %s3043_s15, %s3039_s29 }
  0x27   : > { %686 = vmatpush.bf16.msra.mxu2 %v2500_v40  ;;  %v401_v11 = vunpack.c.l.b16 %v321_v8  ;;  %v3490_v43 = vld [vmem:[%s4929_s2] sm:$0x1f]  ;;  %p3041_p1 = pnand %p3040_p0, %p3172_p5 }
  0x28   : > { %v3497_v44 = vperm.slane %v3490_v43, 1  ;;  %p3046_p7 = por %p3045_p4, %p3044_p3 }
  0x29   : > { %v3437_v13 = vpack.c.b16 %v401_v11, %v401_v11  ;;  %p3042_p2 = pneg %p3041_p1 }
  0x2a   : > { %759 = vmatpush.bf16.msra.mxu3 %v2504_v42  ;;  %2575 = vmatmul.msk.bf16.vlgmr.msra.gmra.mxu2 %vm493_vm0, %v3241_v21 }
  0x2b   : > { %831 = vmatpush.bf16.msrb.mxu0 %v2528_v45  ;;  %5018 = vst [vmem:[#allocation11_spill] sm:$0xff] %v3437_v13  ;;  %v3500_v45 = vperm.slane %v3490_v43, 0  ;;  %p3047_p8 = pnand %p3046_p7, %p3042_p2 }
  0x2d   : > { %2588 = vmatmul.msk.bf16.vlgmr.msra.gmra.mxu3 %vm493_vm0, %v3241_v21 }
  0x2f   : > { %832 = vmatpush.bf16.msrb.mxu0 %v2508_v52 }
  0x35   : > { %2550 = vmatmul.msk.bf16.gmra.mxu0 %vm493_vm0, %v3248_v22  ;;  %2563 = vmatmul.msk.bf16.gmra.mxu1 %vm493_vm0, %v3248_v22 }
  0x3a   : > { %2576 = vmatmul.msk.bf16.gmra.mxu2 %vm493_vm0, %v3248_v22 }
  0x3d   : > { %2589 = vmatmul.msk.bf16.gmra.mxu3 %vm493_vm0, %v3248_v22 }
  0x45   : > { %2551 = vmatmul.msk.bf16.gmra.mxu0 %vm493_vm0, %v3255_v23  ;;  %2564 = vmatmul.msk.bf16.gmra.mxu1 %vm493_vm0, %v3255_v23 }
  0x4a   : > { %2577 = vmatmul.msk.bf16.gmra.mxu2 %vm493_vm0, %v3255_v23 }
  0x4d   : > { %2590 = vmatmul.msk.bf16.gmra.mxu3 %vm493_vm0, %v3255_v23 }
  0x55   : > { %2552 = vmatmul.msk.bf16.gmra.mxu0 %vm493_vm0, %v3286_v36  ;;  %2565 = vmatmul.msk.bf16.gmra.mxu1 %vm493_vm0, %v3286_v36 }
  0x5a   : > { %2578 = vmatmul.msk.bf16.gmra.mxu2 %vm493_vm0, %v3286_v36 }
  0x5d   : > { %2591 = vmatmul.msk.bf16.gmra.mxu3 %vm493_vm0, %v3286_v36 }
  0x65   : > { %2553 = vmatmul.msk.bf16.gmra.mxu0 %vm493_vm0, %v3315_v46  ;;  %2566 = vmatmul.msk.bf16.gmra.mxu1 %vm493_vm0, %v3315_v46 }
  0x6a   : > { %2579 = vmatmul.msk.bf16.gmra.mxu2 %vm493_vm0, %v3315_v46 }
  0x6d   : > { %2592 = vmatmul.msk.bf16.gmra.mxu3 %vm493_vm0, %v3315_v46 }
  0x75   : > { %2554 = vmatmul.msk.bf16.gmra.mxu0 %vm493_vm0, %v3326_v47  ;;  %2567 = vmatmul.msk.bf16.gmra.mxu1 %vm493_vm0, %v3326_v47 }
  0x7a   : > { %2580 = vmatmul.msk.bf16.gmra.mxu2 %vm493_vm0, %v3326_v47 }
  0x7d   : > { %2593 = vmatmul.msk.bf16.gmra.mxu3 %vm493_vm0, %v3326_v47 }
  0x85   : > { %2555 = vmatmul.msk.bf16.gmra.mxu0 %vm493_vm0, %v3337_v48  ;;  %2568 = vmatmul.msk.bf16.gmra.mxu1 %vm493_vm0, %v3337_v48 }
  0x8a   : > { %2581 = vmatmul.msk.bf16.gmra.mxu2 %vm493_vm0, %v3337_v48 }
  0x8d   : > { %2594 = vmatmul.msk.bf16.gmra.mxu3 %vm493_vm0, %v3337_v48 }
  0x95   : > { %2556 = vmatmul.msk.bf16.gmra.mxu0 %vm493_vm0, %v3348_v49  ;;  %2569 = vmatmul.msk.bf16.gmra.mxu1 %vm493_vm0, %v3348_v49 }
  0x9a   : > { %2582 = vmatmul.msk.bf16.gmra.mxu2 %vm493_vm0, %v3348_v49 }
  0x9d   : > { %2595 = vmatmul.msk.bf16.gmra.mxu3 %vm493_vm0, %v3348_v49 }
  0xa2   : > { %v3367_v54 = vpop.f32.mrf.mxu0  ;;  %v3369_v55 = vpop.f32.mrf.mxu1 }
  0xa5   : > { %2557 = vmatmul.msk.bf16.gmra.mxu0 %vm493_vm0, %v3365_v53  ;;  %2570 = vmatmul.msk.bf16.gmra.mxu1 %vm493_vm0, %v3365_v53 }
  0xaa   : > { %v3377_v56 = vpop.f32.mrf.mxu0  ;;  %v3381_v57 = vpop.f32.mrf.mxu1  ;;  %2583 = vmatmul.msk.bf16.gmra.mxu2 %vm493_vm0, %v3365_v53 }
  0xad   : > { %2596 = vmatmul.msk.bf16.gmra.mxu3 %vm493_vm0, %v3365_v53  ;;  %v3433_v10 = vpop.f32.mrf.mxu2 }
  0xae   : > { %5016 = vst [vmem:[#allocation9_spill] sm:$0xff] %v3433_v10 }
  0xb0   : > { %v3435_v12 = vpop.f32.mrf.mxu3 }
  0xb1   : > { %5017 = vst [vmem:[#allocation10_spill] sm:$0xff] %v3435_v12  ;;  %v1100_v12 = vld [vmem:[#allocation2 + $0x258] sm:$0xff] }
  0xb2   : > { %v3386_v59 = vpop.f32.mrf.mxu0  ;;  %v3388_v60 = vpop.f32.mrf.mxu1 }
  0xb5   : > { %2558 = vmatmul.msk.bf16.gmra.mxu0 %vm493_vm0, %v3384_v58  ;;  %2571 = vmatmul.msk.bf16.gmra.mxu1 %vm493_vm0, %v3384_v58  ;;  %v3443_v16 = vpop.f32.mrf.mxu2 }
  0xb6   : > { %5019 = vst [vmem:[#allocation12_spill] sm:$0xff] %v3443_v16  ;;  %v1096_v16 = vld [vmem:[#allocation2 + $0x238] sm:$0xff] }
  0xb8   : > { %v3447_v17 = vpop.f32.mrf.mxu3 }
  0xb9   : > { %5020 = vst [vmem:[#allocation13_spill] sm:$0xff] %v3447_v17  ;;  %v1101_v17 = vld [vmem:[#allocation2 + $0x260] sm:$0xff] }
  0xba   : > { %v3396_v61 = vpop.f32.mrf.mxu0  ;;  %v3400_v62 = vpop.f32.mrf.mxu1  ;;  %2584 = vmatmul.msk.bf16.gmra.mxu2 %vm493_vm0, %v3384_v58 }
  0xbd   : > { %2597 = vmatmul.msk.bf16.gmra.mxu3 %vm493_vm0, %v3384_v58  ;;  %v3459_v20 = vpop.f32.mrf.mxu2  ;;  %v1090_v58 = vld [vmem:[#allocation2 + $0x208] sm:$0xff] }
  0xbe   : > { %5021 = vst [vmem:[#allocation14_spill] sm:$0xff] %v3459_v20 }
  0xc0   : > { %v3461_v24 = vpop.f32.mrf.mxu3 }
  0xc1   : > { %5022 = vst [vmem:[#allocation15_spill] sm:$0xff] %v3461_v24  ;;  %v1095_v24 = vld [vmem:[#allocation2 + $0x230] sm:$0xff] }
  0xc2   : > { %v3403_v0 = vpop.f32.mrf.mxu0  ;;  %v3405_v1 = vpop.f32.mrf.mxu1 }
  0xc5   : > { %2559 = vmatmul.msk.bf16.gmra.mxu0 %vm493_vm0, %v2847_v63  ;;  %2572 = vmatmul.msk.bf16.gmra.mxu1 %vm493_vm0, %v2847_v63  ;;  %v3463_v27 = vpop.f32.mrf.mxu2 }
  0xc6   : > { %5023 = vst [vmem:[#allocation16_spill] sm:$0xff] %v3463_v27 }
  0xc8   : > { %v3467_v28 = vpop.f32.mrf.mxu3 }
  0xc9   : > { %5024 = vst [vmem:[#allocation17_spill] sm:$0xff] %v3467_v28  ;;  %v1091_v28 = vld [vmem:[#allocation2 + $0x210] sm:$0xff] }
  0xca   : > { %v3411_v2 = vpop.f32.mrf.mxu0  ;;  %v3415_v3 = vpop.f32.mrf.mxu1  ;;  %2585 = vmatmul.msk.bf16.gmra.mxu2 %vm493_vm0, %v2847_v63 }
  0xcd   : > { %2598 = vmatmul.msk.bf16.gmra.mxu3 %vm493_vm0, %v2847_v63  ;;  %v3471_v31 = vpop.f32.mrf.mxu2 }
  0xce   : > { %5025 = vst [vmem:[#allocation18_spill] sm:$0xff] %v3471_v31 }
  0xd0   : > { %v3473_v32 = vpop.f32.mrf.mxu3 }
  0xd1   : > { %5026 = vst [vmem:[#allocation19_spill] sm:$0xff] %v3473_v32 }
  0xd2   : > { %v3418_v5 = vpop.f32.mrf.mxu0  ;;  %v3420_v6 = vpop.f32.mrf.mxu1 }
  0xd5   : > { %2560 = vmatmul.msk.bf16.gmra.mxu0 %vm493_vm0, %v2848_v4  ;;  %2573 = vmatmul.msk.bf16.gmra.mxu1 %vm493_vm0, %v2848_v4  ;;  %v3475_v35 = vpop.f32.mrf.mxu2 }
  0xda   : > { %v3426_v7 = vpop.f32.mrf.mxu0  ;;  %v3431_v9 = vpop.f32.mrf.mxu1  ;;  %2586 = vmatmul.msk.bf16.gmra.mxu2 %vm493_vm0, %v2848_v4 }
  0xdd   : > { %2599 = vmatmul.msk.bf16.gmra.mxu3 %vm493_vm0, %v2848_v4  ;;  %v3483_v39 = vpop.f32.mrf.mxu2 }
  0xe2   : > { %v3439_v14 = vpop.f32.mrf.mxu0  ;;  %v3441_v15 = vpop.f32.mrf.mxu1 }
  0xe5   : > { %2561 = vmatmul.msk.bf16.gmra.mxu0 %vm493_vm0, %v3437_v13  ;;  %2574 = vmatmul.msk.bf16.gmra.mxu1 %vm493_vm0, %v3437_v13 }
  0xea   : > { %v3453_v18 = vpop.f32.mrf.mxu0  ;;  %v3457_v19 = vpop.f32.mrf.mxu1  ;;  %2587 = vmatmul.msk.bf16.gmra.mxu2 %vm493_vm0, %v3437_v13 }
  0xed   : > { %2600 = vmatmul.msk.bf16.gmra.mxu3 %vm493_vm0, %v3437_v13 }
  0xf2   : > { %v567_v25 = vpop.f32.mrf.mxu0  ;;  %v640_v26 = vpop.f32.mrf.mxu1 }
  0xf3   : > { %v3549_v27 = vadd.f32 %v640_v26, %v3497_v44  ;;  %v1086_v26 = vld [vmem:[#allocation2 + $0x1e8] sm:$0xff] }
  0xf5   : > { %2601 = vmatmul.msk.bf16.vlgmr.msrb.gmra.mxu0 %vm493_vm0, %v3241_v21  ;;  %v3479_v21 = vpop.f32.mrf.mxu3  ;;  %5033 = vst [vmem:[#allocation26_spill] sm:$0xff] %v3549_v27 }
  0xfa   : > { %v569_v29 = vpop.f32.mrf.mxu0  ;;  %v642_v30 = vpop.f32.mrf.mxu1 }
  0xfb   : > { %v3543_v20 = vadd.f32 %v569_v29, %v3500_v45  ;;  %v3557_v29 = vadd.f32 %v567_v25, %v3500_v45 }
  0xfd   : > { %v3485_v40 = vpop.f32.mrf.mxu3  ;;  %5032 = vst [vmem:[#allocation25_spill] sm:$0xff] %v3543_v20 }
  0xfe   : > { %5035 = vst [vmem:[#allocation27_spill] sm:$0xff] %v3557_v29 }
 0x102   : > { %v572_v33 = vpop.f32.mrf.mxu0  ;;  %v645_v34 = vpop.f32.mrf.mxu1 }
 0x103   : > { %v3533_v13 = vadd.f32 %v572_v33, %v3500_v45 }
 0x105   : > { %2602 = vmatmul.msk.bf16.gmra.mxu0 %vm493_vm0, %v3248_v22  ;;  %v3492_v22 = vpop.f32.mrf.mxu2 }
 0x10a   : > { %v574_v37 = vpop.f32.mrf.mxu0  ;;  %v647_v38 = vpop.f32.mrf.mxu1 }
 0x10b   : > { %v3511_v52 = vadd.f32 %v647_v38, %v3497_v44  ;;  %v3518_v4 = vadd.f32 %v574_v37, %v3500_v45 }
 0x10d   : > { %5028 = vst [vmem:[#allocation21_spill] sm:$0xff] %v3511_v52  ;;  %v3530_v10 = vpop.f32.mrf.mxu2 }
 0x112   : > { %v577_v41 = vpop.f32.mrf.mxu0  ;;  %v650_v42 = vpop.f32.mrf.mxu1 }
 0x113   : > { %v3503_v50 = vadd.f32 %v650_v42, %v3497_v44  ;;  %v3506_v51 = vadd.f32 %v577_v41, %v3500_v45  ;;  %v3524_v41 = vadd.f32 %v645_v34, %v3497_v44  ;;  %v3538_v34 = vadd.f32 %v642_v30, %v3497_v44 }
 0x114   : > { %v3564_v30 = vadd.f32 %v3457_v19, %v3497_v44  ;;  %v5040_v19 = vmax.f32 %v3518_v4, 0.0 }
 0x115   : > { %2603 = vmatmul.msk.bf16.gmra.mxu0 %vm493_vm0, %v3255_v23  ;;  %5027 = vst [vmem:[#allocation20_spill] sm:$0xff] %v3503_v50  ;;  %v3513_v23 = vpop.f32.mrf.mxu3  ;;  %v5034_v32 = vmax.f32 %v3503_v50, 0.0 }
 0x116   : > { %5029 = vst [vmem:[#allocation22_spill] sm:$0xff] %v3524_v41  ;;  %v1215_v33 = vmul.f32 %v1090_v58, %v5040_v19  ;;  %v1076_v19 = vld [vmem:[#allocation2 + $0x198] sm:$0xff]  ;;  %v3609_v58 = vadd.f32 %v3426_v7, %v3500_v45  ;;  %v3623_v7 = vadd.f32 %v3418_v5, %v3500_v45 }
 0x117   : > { %5031 = vst [vmem:[#allocation24_spill] sm:$0xff] %v3538_v34  ;;  %v1221_v31 = vmul.f32 %v1096_v16, %v5034_v32  ;;  %v5038_v16 = vmax.f32 %v3511_v52, 0.0  ;;  %v1085_v32 = vld [vmem:[#allocation2 + $0x1e0] sm:$0xff]  ;;  %v1080_v52 = vld [vmem:[#allocation2 + $0x1b8] sm:$0xff] }
 0x118   : > { %5037 = vst [vmem:[#allocation28_spill] sm:$0xff] %v3564_v30 }
 0x119   : > { %v1216_v25 = vmul.f32 %v1091_v28, %v5038_v16  ;;  %v5042_v16 = vmax.f32 %v3524_v41, 0.0  ;;  %v1075_v41 = vld [vmem:[#allocation2 + $0x190] sm:$0xff]  ;;  %5047 = vst [vmem:[#allocation33_spill] sm:$0xff] %v3609_v58 }
 0x11a   : > { %v579_v63 = vpop.f32.mrf.mxu0  ;;  %v652_v11 = vpop.f32.mrf.mxu1  ;;  %5051 = vst [vmem:[#allocation35_spill] sm:$0xff] %v3623_v7 }
 0x11b   : > { %v3521_v8 = vadd.f32 %v579_v63, %v3500_v45  ;;  %v3528_v38 = vadd.f32 %v652_v11, %v3497_v44 }
 0x11d   : > { %5030 = vst [vmem:[#allocation23_spill] sm:$0xff] %v3528_v38  ;;  %v4937_v63 = vmax.f32 %v3521_v8, 0.0  ;;  %v4938_v11 = vmax.f32 %v3528_v38, 0.0  ;;  %v3587_v50 = vpop.f32.mrf.mxu3 }
 0x11f   : > { %v1225_v37 = vmul.f32 %v1100_v12, %v4937_v63  ;;  %v1226_v42 = vmul.f32 %v1101_v17, %v4938_v11  ;;  %v5036_v12 = vmax.f32 %v3506_v51, 0.0  ;;  %v1081_v17 = vld [vmem:[#allocation2 + $0x1c0] sm:$0xff] }
 0x121   : > { %1279 = vmatpush.msrb.mxu1 %v1225_v37  ;;  %v1220_v63 = vmul.f32 %v1095_v24, %v5036_v12  ;;  %1319 = vmatpush.msrb.mxu3 %v1226_v42  ;;  %v3573_v37 = vadd.f32 %v3453_v18, %v3500_v45  ;;  %v3582_v42 = vadd.f32 %v3441_v15, %v3497_v44  ;;  %v3589_v24 = vpop.f32.mrf.mxu2  ;;  %v5044_v15 = vmax.f32 %v3533_v13, 0.0 }
 0x122   : > { %v3567_v11 = vpop.f32.mrf.mxu0  ;;  %v3576_v12 = vpop.f32.mrf.mxu1  ;;  %v1211_v18 = vmul.f32 %v1086_v26, %v5042_v16  ;;  %v3602_v26 = vadd.f32 %v3431_v9, %v3497_v44  ;;  %v3616_v9 = vadd.f32 %v3420_v6, %v3497_v44  ;;  %v1070_v16 = vld [vmem:[#allocation2 + $0x168] sm:$0xff]  ;;  %v3630_v6 = vadd.f32 %v3415_v3, %v3497_v44 }
 0x123   : > { %5039 = vst [vmem:[#allocation29_spill] sm:$0xff] %v3573_v37  ;;  %1280 = vmatpush.msrb.mxu1 %v1220_v63  ;;  %1320 = vmatpush.msrb.mxu3 %v1221_v31  ;;  %v3593_v63 = vadd.f32 %v3439_v14, %v3500_v45  ;;  %v1210_v31 = vmul.f32 %v1085_v32, %v5044_v15  ;;  %v5046_v14 = vmax.f32 %v3538_v34, 0.0  ;;  %v1071_v15 = vld [vmem:[#allocation2 + $0x170] sm:$0xff]  ;;  %v5056_v3 = vmax.f32 %v3573_v37, 0.0 }
 0x124   : > { %5041 = vst [vmem:[#allocation30_spill] sm:$0xff] %v3582_v42  ;;  %v1031_v34 = vld [vmem:[#allocation2 + $0x30] sm:$0xff] }
 0x125   : > { %5043 = vst [vmem:[#allocation31_spill] sm:$0xff] %v3593_v63  ;;  %2604 = vmatmul.msk.bf16.gmra.mxu0 %vm493_vm0, %v3286_v36  ;;  %1281 = vmatpush.msrb.mxu1 %v1215_v33  ;;  %v1206_v28 = vmul.f32 %v1081_v17, %v5046_v14  ;;  %v5048_v33 = vmax.f32 %v3543_v20, 0.0  ;;  %v5050_v17 = vmax.f32 %v3549_v27, 0.0  ;;  %v1066_v36 = vld [vmem:[#allocation2 + $0x148] sm:$0xff]  ;;  %v1135_v20 = vld [vmem:[#allocation2 + $0x370] sm:$0xff] }
 0x126   : > { %5045 = vst [vmem:[#allocation32_spill] sm:$0xff] %v3602_v26  ;;  %1321 = vmatpush.msrb.mxu3 %v1216_v25  ;;  %v1065_v25 = vld [vmem:[#allocation2 + $0x140] sm:$0xff] }
 0x127   : > { %1282 = vmatpush.msrb.mxu1 %v1210_v31  ;;  %v1205_v32 = vmul.f32 %v1080_v52, %v5048_v33  ;;  %5049 = vst [vmem:[#allocation34_spill] sm:$0xff] %v3616_v9  ;;  %v1201_v14 = vmul.f32 %v1076_v19, %v5050_v17  ;;  %v5052_v52 = vmax.f32 %v3557_v29, 0.0  ;;  %v5054_v17 = vmax.f32 %v3564_v30, 0.0  ;;  %v1060_v30 = vld [vmem:[#allocation2 + $0x118] sm:$0xff] }
 0x128   : > { %1322 = vmatpush.msrb.mxu3 %v1211_v18  ;;  %5053 = vst [vmem:[#allocation36_spill] sm:$0xff] %v3630_v6  ;;  %v1195_v31 = vmul.f32 %v1070_v16, %v5056_v3  ;;  %v1061_v18 = vld [vmem:[#allocation2 + $0x120] sm:$0xff]  ;;  %v5060_v3 = vmax.f32 %v3593_v63, 0.0  ;;  %v1051_v16 = vld [vmem:[#allocation2 + $0xd0] sm:$0xff] }
 0x129   : > { %1283 = vmatpush.msrb.mxu1 %v1205_v32  ;;  %v1200_v33 = vmul.f32 %v1075_v41, %v5052_v52  ;;  %v1196_v5 = vmul.f32 %v1071_v15, %v5054_v17  ;;  %v3639_v32 = vadd.f32 %v3411_v2, %v3500_v45  ;;  %v5058_v17 = vmax.f32 %v3582_v42, 0.0  ;;  %v3653_v27 = vpop.f32.mrf.mxu2  ;;  %v1056_v41 = vld [vmem:[#allocation2 + $0xf8] sm:$0xff]  ;;  %v1055_v42 = vld [vmem:[#allocation2 + $0xf0] sm:$0xff] }
 0x12a   : > { %1323 = vmatpush.msrb.mxu3 %v1206_v28  ;;  %v3633_v19 = vpop.f32.mrf.mxu0  ;;  %v3642_v52 = vpop.f32.mrf.mxu1  ;;  %v3648_v28 = vadd.f32 %v3405_v1, %v3497_v44  ;;  %v1190_v1 = vmul.f32 %v1065_v25, %v5060_v3  ;;  %v5064_v3 = vmax.f32 %v3609_v58, 0.0  ;;  %v1046_v25 = vld [vmem:[#allocation2 + $0xa8] sm:$0xff]  ;;  %v1136_v58 = vld [vmem:[#allocation2 + $0x378] sm:$0xff] }
 0x12b   : > { %5055 = vst [vmem:[#allocation37_spill] sm:$0xff] %v3639_v32  ;;  %1284 = vmatpush.msrb.mxu1 %v1200_v33  ;;  %v1191_v2 = vmul.f32 %v1066_v36, %v5058_v17  ;;  %v3657_v33 = vadd.f32 %v3403_v0, %v3500_v45  ;;  %v5062_v17 = vmax.f32 %v3602_v26, 0.0  ;;  %v3669_v0 = vpop.f32.mrf.mxu3  ;;  %v1050_v26 = vld [vmem:[#allocation2 + $0xc8] sm:$0xff] }
 0x12c   : > { %5057 = vst [vmem:[#allocation38_spill] sm:$0xff] %v3648_v28  ;;  %1324 = vmatpush.msrb.mxu3 %v1201_v14  ;;  %v3664_v14 = vadd.f32 %v3400_v62, %v3497_v44  ;;  %v1185_v62 = vmul.f32 %v1060_v30, %v5064_v3  ;;  %v5068_v30 = vmax.f32 %v3623_v7, 0.0 }
 0x12d   : > { %5059 = vst [vmem:[#allocation39_spill] sm:$0xff] %v3657_v33  ;;  %1285 = vmatpush.msrb.mxu1 %v1195_v31  ;;  %v1186_v15 = vmul.f32 %v1061_v18, %v5062_v17  ;;  %v3673_v31 = vadd.f32 %v3396_v61, %v3500_v45  ;;  %v5066_v17 = vmax.f32 %v3616_v9, 0.0  ;;  %v3687_v61 = vadd.f32 %v3386_v59, %v3500_v45  ;;  %v1045_v18 = vld [vmem:[#allocation2 + $0xa0] sm:$0xff] }
 0x12e   : > { %5061 = vst [vmem:[#allocation40_spill] sm:$0xff] %v3664_v14  ;;  %1325 = vmatpush.msrb.mxu3 %v1196_v5  ;;  %v3680_v5 = vadd.f32 %v3388_v60, %v3497_v44  ;;  %v1180_v3 = vmul.f32 %v1055_v42, %v5068_v30  ;;  %v3694_v60 = vadd.f32 %v3381_v57, %v3497_v44  ;;  %v5072_v57 = vmax.f32 %v3639_v32, 0.0  ;;  %v1035_v42 = vld [vmem:[#allocation2 + $0x50] sm:$0xff] }
 0x12f   : > { %5063 = vst [vmem:[#allocation41_spill] sm:$0xff] %v3673_v31  ;;  %1286 = vmatpush.msrb.mxu1 %v1190_v1  ;;  %v1181_v36 = vmul.f32 %v1056_v41, %v5066_v17  ;;  %v5070_v17 = vmax.f32 %v3630_v6, 0.0  ;;  %v1040_v6 = vld [vmem:[#allocation2 + $0x78] sm:$0xff] }
 0x130   : > { %5065 = vst [vmem:[#allocation42_spill] sm:$0xff] %v3680_v5  ;;  %1326 = vmatpush.msrb.mxu3 %v1191_v2  ;;  %v1175_v1 = vmul.f32 %v1050_v26, %v5072_v57  ;;  %v1041_v2 = vld [vmem:[#allocation2 + $0x80] sm:$0xff]  ;;  %v5078_v26 = vmax.f32 %v3673_v31, 0.0 }
 0x131   : > { %5067 = vst [vmem:[#allocation43_spill] sm:$0xff] %v3687_v61  ;;  %1287 = vmatpush.msrb.mxu1 %v1185_v62  ;;  %v1176_v59 = vmul.f32 %v1051_v16, %v5070_v17  ;;  %v3703_v62 = vadd.f32 %v3377_v56, %v3500_v45  ;;  %v5074_v17 = vmax.f32 %v3648_v28, 0.0  ;;  %v3717_v9 = vpop.f32.mrf.mxu2 }
 0x132   : > { %5069 = vst [vmem:[#allocation44_spill] sm:$0xff] %v3694_v60  ;;  %1327 = vmatpush.msrb.mxu3 %v1186_v15  ;;  %v3697_v41 = vpop.f32.mrf.mxu0  ;;  %v3706_v30 = vpop.f32.mrf.mxu1  ;;  %v3712_v15 = vadd.f32 %v3369_v55, %v3497_v44  ;;  %v5076_v55 = vmax.f32 %v3657_v33, 0.0  ;;  %v1165_v28 = vmul.f32 %v1040_v6, %v5078_v26  ;;  %v5081_v6 = vmax.f32 %v3694_v60, 0.0  ;;  %v1145_v33 = vld [vmem:[#allocation2 + $0x3c0] sm:$0xff] }
 0x133   : > { %5071 = vst [vmem:[#allocation45_spill] sm:$0xff] %v3703_v62  ;;  %1288 = vmatpush.msrb.mxu1 %v1180_v3  ;;  %v1171_v56 = vmul.f32 %v1046_v25, %v5074_v17  ;;  %v3721_v3 = vadd.f32 %v3367_v54, %v3500_v45  ;;  %v5077_v25 = vmax.f32 %v3664_v14, 0.0  ;;  %v3737_v16 = vpop.f32.mrf.mxu3 }
 0x134   : > { %5073 = vst [vmem:[#allocation46_spill] sm:$0xff] %v3712_v15  ;;  %1328 = vmatpush.msrb.mxu3 %v1181_v36  ;;  %v1170_v57 = vmul.f32 %v1045_v18, %v5076_v55  ;;  %v1036_v36 = vld [vmem:[#allocation2 + $0x58] sm:$0xff]  ;;  %v5079_v18 = vmax.f32 %v3680_v5, 0.0  ;;  %v1030_v55 = vld [vmem:[#allocation2 + $0x28] sm:$0xff]  ;;  %v1156_v26 = vmul.f32 %v1031_v34, %v5081_v6 }
 0x135   : > { %5075 = vst [vmem:[#allocation47_spill] sm:$0xff] %v3721_v3  ;;  %2605 = vmatmul.msk.bf16.gmra.mxu0 %vm493_vm0, %v3315_v46  ;;  %1289 = vmatpush.msrb.mxu1 %v1175_v1  ;;  %v1166_v17 = vmul.f32 %v1041_v2, %v5077_v25  ;;  %v5080_v2 = vmax.f32 %v3687_v61, 0.0 }
 0x136   : > { %1329 = vmatpush.msrb.mxu3 %v1176_v59  ;;  %v1161_v1 = vmul.f32 %v1036_v36, %v5079_v18  ;;  %v5082_v36 = vmax.f32 %v3703_v62, 0.0  ;;  %v5083_v59 = vmax.f32 %v3712_v15, 0.0 }
 0x137   : > { %1290 = vmatpush.msrb.mxu1 %v1170_v57  ;;  %v1160_v25 = vmul.f32 %v1035_v42, %v5080_v2  ;;  %v1026_v57 = vld [vmem:[#allocation2 + $0x8] sm:$0xff]  ;;  %v5084_v42 = vmax.f32 %v3721_v3, 0.0 }
 0x138   : > { %1330 = vmatpush.msrb.mxu3 %v1171_v56  ;;  %v1025_v56 = vld [vmem:[#allocation2] sm:$0xff]  ;;  %v1155_v18 = vmul.f32 %v1030_v55, %v5082_v36 }
 0x139   : > { %1291 = vmatpush.msrb.mxu1 %v1165_v28  ;;  %v1151_v28 = vmul.f32 %v1026_v57, %v5083_v59  ;;  %v3750_v5 = vpop.f32.mrf.mxu2 }
 0x13a   : > { %1331 = vmatpush.msrb.mxu3 %v1166_v17  ;;  %v3742_v54 = vpop.f32.mrf.mxu0  ;;  %v662_v46 = vpop.f32.mrf.mxu1  ;;  %v1150_v17 = vmul.f32 %v1025_v56, %v5084_v42 }
 0x13b   : > { %1292 = vmatpush.msrb.mxu1 %v1160_v25  ;;  %v3754_v2 = vpop.f32.mrf.mxu3  ;;  %v3822_v37 = vadd.f32 %v662_v46, %v3497_v44 }
 0x13c   : > { %1332 = vmatpush.msrb.mxu3 %v1161_v1 }
 0x13d   : > { %1293 = vmatpush.msrb.mxu1 %v1155_v18  ;;  %5096 = vst [vmem:[#allocation59_spill] sm:$0xff] %v3822_v37 }
 0x13e   : > { %1333 = vmatpush.msrb.mxu3 %v1156_v26 }
 0x13f   : > { %1294 = vmatpush.msrb.mxu1 %v1150_v17 }
 0x140   : > { %1334 = vmatpush.msrb.mxu3 %v1151_v28 }
 0x141   : > { %v3758_v1 = vpop.f32.mrf.mxu2 }
 0x142   : > { %v592_v34 = vpop.f32.mrf.mxu0  ;;  %v665_v25 = vpop.f32.mrf.mxu1 }
 0x143   : > { %v3760_v57 = vpop.f32.mrf.mxu3 }
 0x145   : > { %2606 = vmatmul.msk.bf16.gmra.mxu0 %vm493_vm0, %v3326_v47  ;;  %v3773_v47 = vld [vmem:[%s4931_s4] sm:$0xff] }
 0x146   : > { %1295 = vmatmul.f32.vlgmr.msrb.gmra.mxu1 %v3773_v47  ;;  %1335 = vmatmul.f32.vlgmr.msrb.gmra.mxu3 %v3773_v47 }
 0x149   : > { %v3762_v6 = vpop.f32.mrf.mxu2 }
 0x14a   : > { %v594_v55 = vpop.f32.mrf.mxu0  ;;  %v667_v59 = vpop.f32.mrf.mxu1 }
 0x14b   : > { %v3766_v26 = vpop.f32.mrf.mxu3 }
 0x151   : > { %v3768_v18 = vpop.f32.mrf.mxu2 }
 0x152   : > { %v597_v36 = vpop.f32.mrf.mxu0  ;;  %v670_v56 = vpop.f32.mrf.mxu1 }
 0x153   : > { %v3780_v15 = vpop.f32.mrf.mxu3  ;;  %v3788_v14 = vadd.f32 %v670_v56, %v3497_v44  ;;  %v3791_v3 = vadd.f32 %v597_v36, %v3500_v45  ;;  %v3804_v56 = vadd.f32 %v594_v55, %v3500_v45  ;;  %v1141_v36 = vld [vmem:[#allocation2 + $0x3a0] sm:$0xff]  ;;  %v3816_v55 = vadd.f32 %v592_v34, %v3500_v45 }
 0x154   : > { %v3831_v34 = vadd.f32 %v3742_v54, %v3500_v45 }
 0x155   : > { %2607 = vmatmul.msk.bf16.gmra.mxu0 %vm493_vm0, %v3337_v48  ;;  %5088 = vst [vmem:[#allocation51_spill] sm:$0xff] %v3788_v14 }
 0x156   : > { %5089 = vst [vmem:[#allocation52_spill] sm:$0xff] %v3791_v3 }
 0x157   : > { %5093 = vst [vmem:[#allocation56_spill] sm:$0xff] %v3804_v56 }
 0x158   : > { %5095 = vst [vmem:[#allocation58_spill] sm:$0xff] %v3816_v55 }
 0x159   : > { %v3785_v60 = vpop.f32.mrf.mxu2  ;;  %5098 = vst [vmem:[#allocation60_spill] sm:$0xff] %v3831_v34 }
 0x15a   : > { %v599_v28 = vpop.f32.mrf.mxu0  ;;  %v672_v42 = vpop.f32.mrf.mxu1  ;;  %5087 = vst [vmem:[#allocation50_spill] sm:$0xff] %v3785_v60  ;;  %v1140_v60 = vld [vmem:[#allocation2 + $0x398] sm:$0xff] }
 0x15b   : > { %v3778_v17 = vadd.f32 %v672_v42, %v3497_v44  ;;  %v3783_v48 = vadd.f32 %v599_v28, %v3500_v45  ;;  %v3797_v42 = vadd.f32 %v667_v59, %v3497_v44  ;;  %v3811_v59 = vadd.f32 %v665_v25, %v3497_v44  ;;  %v798_v32 = vpop.f32.mrf.mxu3 }
 0x15d   : > { %5085 = vst [vmem:[#allocation48_spill] sm:$0xff] %v3778_v17  ;;  %v5097_v25 = vmax.f32 %v3778_v17, 0.0 }
 0x15e   : > { %5086 = vst [vmem:[#allocation49_spill] sm:$0xff] %v3783_v48 }
 0x15f   : > { %5091 = vst [vmem:[#allocation54_spill] sm:$0xff] %v3797_v42  ;;  %v1266_v31 = vmul.f32 %v1141_v36, %v5097_v25  ;;  %v3840_v36 = vadd.f32 %v3706_v30, %v3497_v44  ;;  %v5101_v25 = vmax.f32 %v3788_v14, 0.0  ;;  %v5103_v30 = vmax.f32 %v3791_v3, 0.0  ;;  %v1048_v3 = vld [vmem:[#allocation2 + $0xb8] sm:$0xff] }
 0x160   : > { %5094 = vst [vmem:[#allocation57_spill] sm:$0xff] %v3811_v59 }
 0x161   : > { %5100 = vst [vmem:[#allocation61_spill] sm:$0xff] %v3840_v36  ;;  %v1260_v17 = vmul.f32 %v1135_v20, %v5103_v30  ;;  %v3867_v20 = vadd.f32 %v3633_v19, %v3500_v45  ;;  %v1121_v30 = vld [vmem:[#allocation2 + $0x300] sm:$0xff] }
 0x162   : > { %v602_v38 = vpop.f32.mrf.mxu0  ;;  %v675_v61 = vpop.f32.mrf.mxu1 }
 0x163   : > { %v3794_v62 = vadd.f32 %v602_v38, %v3500_v45  ;;  %v3801_v28 = vadd.f32 %v675_v61, %v3497_v44  ;;  %v1146_v38 = vld [vmem:[#allocation2 + $0x3c8] sm:$0xff]  ;;  %5106 = vst [vmem:[#allocation64_spill] sm:$0xff] %v3867_v20 }
 0x165   : > { %5090 = vst [vmem:[#allocation53_spill] sm:$0xff] %v3794_v62  ;;  %v4968_v7 = vmax.f32 %v3794_v62, 0.0  ;;  %2608 = vmatmul.msk.bf16.gmra.mxu0 %vm493_vm0, %v3348_v49  ;;  %v4969_v61 = vmax.f32 %v3801_v28, 0.0  ;;  %v1131_v62 = vld [vmem:[#allocation2 + $0x350] sm:$0xff]  ;;  %v1130_v49 = vld [vmem:[#allocation2 + $0x348] sm:$0xff] }
 0x166   : > { %5092 = vst [vmem:[#allocation55_spill] sm:$0xff] %v3801_v28 }
 0x167   : > { %v1270_v63 = vmul.f32 %v1145_v33, %v4968_v7  ;;  %v1271_v29 = vmul.f32 %v1146_v38, %v4969_v61  ;;  %v5099_v33 = vmax.f32 %v3783_v48, 0.0  ;;  %v3836_v7 = vpop.f32.mrf.mxu2  ;;  %v1261_v61 = vmul.f32 %v1136_v58, %v5101_v25  ;;  %v5155_v48 = vld [vmem:[#allocation13_spill] sm:$0xff] }
 0x168   : > { %v3853_v38 = vperm.slane %v3490_v43, 2  ;;  %v3874_v58 = vadd.f32 %v3576_v12, %v3497_v44 }
 0x169   : > { %1306 = vmatpush.msrb.mxu2 %v1270_v63  ;;  %v1265_v46 = vmul.f32 %v1140_v60, %v5099_v33  ;;  %1346 = vmatpush.msra.mxu1 %v1271_v29  ;;  %v3847_v63 = vadd.f32 %v3697_v41, %v3500_v45  ;;  %v1126_v33 = vld [vmem:[#allocation2 + $0x328] sm:$0xff]  ;;  %v3857_v29 = vadd.f32 %v3642_v52, %v3497_v44  ;;  %v5105_v41 = vmax.f32 %v3797_v42, 0.0 }
 0x16a   : > { %v604_v54 = vpop.f32.mrf.mxu0  ;;  %v677_v28 = vpop.f32.mrf.mxu1  ;;  %v5107_v52 = vmax.f32 %v3804_v56, 0.0  ;;  %5108 = vst [vmem:[#allocation65_spill] sm:$0xff] %v3874_v58  ;;  %v3881_v19 = vadd.f32 %v3768_v18, %v3853_v38  ;;  %v5111_v44 = vmax.f32 %v3816_v55, 0.0  ;;  %v5112_v18 = vmax.f32 %v3822_v37, 0.0  ;;  %v1103_v37 = vld [vmem:[#allocation2 + $0x270] sm:$0xff]  ;;  %v5153_v56 = vld [vmem:[#allocation12_spill] sm:$0xff] }
 0x16b   : > { %5102 = vst [vmem:[#allocation62_spill] sm:$0xff] %v3847_v63  ;;  %1307 = vmatpush.msrb.mxu2 %v1265_v46  ;;  %v1256_v25 = vmul.f32 %v1131_v62, %v5105_v41  ;;  %1347 = vmatpush.msra.mxu1 %v1266_v31  ;;  %v1125_v54 = vld [vmem:[#allocation2 + $0x320] sm:$0xff]  ;;  %v3863_v46 = vperm.slane %v3490_v43, 3  ;;  %v4972_v28 = vmax.f32 %v3831_v34, 0.0  ;;  %v5109_v43 = vmax.f32 %v3811_v59, 0.0  ;;  %v1120_v41 = vld [vmem:[#allocation2 + $0x2f8] sm:$0xff] }
 0x16c   : > { %5104 = vst [vmem:[#allocation63_spill] sm:$0xff] %v3857_v29  ;;  %v1255_v60 = vmul.f32 %v1130_v49, %v5107_v52  ;;  %v4976_v49 = vmax.f32 %v3847_v63, 0.0  ;;  %v1116_v52 = vld [vmem:[#allocation2 + $0x2d8] sm:$0xff]  ;;  %v1250_v12 = vmul.f32 %v1125_v54, %v5111_v44  ;;  %v4061_v42 = vadd.f32 %v3475_v35, %v3853_v38 }
 0x16d   : > { %1308 = vmatpush.msrb.mxu2 %v1260_v17  ;;  %v1251_v62 = vmul.f32 %v1126_v33, %v5109_v43  ;;  %1348 = vmatpush.msra.mxu1 %v1261_v61  ;;  %v3885_v17 = vadd.f32 %v3567_v11, %v3500_v45  ;;  %v3891_v31 = vadd.f32 %v798_v32, %v3863_v46  ;;  %v1115_v45 = vld [vmem:[#allocation2 + $0x2d0] sm:$0xff]  ;;  %v3919_v61 = vpop.f32.mrf.mxu3 }
 0x16e   : > { %v1246_v33 = vmul.f32 %v1121_v30, %v5112_v18  ;;  %v3898_v43 = vadd.f32 %v3762_v6, %v3853_v38  ;;  %v3903_v54 = vadd.f32 %v3780_v15, %v3863_v46  ;;  %v1245_v32 = vmul.f32 %v1120_v41, %v4972_v28  ;;  %v1106_v28 = vld [vmem:[#allocation2 + $0x288] sm:$0xff] }
 0x16f   : > { %5110 = vst [vmem:[#allocation66_spill] sm:$0xff] %v3885_v17  ;;  %1309 = vmatpush.msrb.mxu2 %v1255_v60  ;;  %1349 = vmatpush.msra.mxu1 %v1256_v25  ;;  %v1111_v60 = vld [vmem:[#allocation2 + $0x2b0] sm:$0xff]  ;;  %v3907_v44 = vpop.f32.mrf.mxu2  ;;  %v5113_v6 = vmax.f32 %v3840_v36, 0.0  ;;  %v3914_v25 = vadd.f32 %v3758_v1, %v3853_v38  ;;  %v3924_v30 = vadd.f32 %v3766_v26, %v3863_v46  ;;  %v1105_v26 = vld [vmem:[#allocation2 + $0x280] sm:$0xff] }
 0x170   : > { %v1240_v1 = vmul.f32 %v1115_v45, %v4976_v49  ;;  %v3933_v36 = vadd.f32 %v3750_v5, %v3853_v38  ;;  %v3938_v59 = vadd.f32 %v3760_v57, %v3863_v46  ;;  %v5115_v45 = vmax.f32 %v3867_v20, 0.0  ;;  %v5145_v20 = vld [vmem:[#allocation16_spill] sm:$0xff] }
 0x171   : > { %1310 = vmatpush.msrb.mxu2 %v1250_v12  ;;  %v1241_v18 = vmul.f32 %v1116_v52, %v5113_v6  ;;  %1350 = vmatpush.msra.mxu1 %v1251_v62  ;;  %v1110_v12 = vld [vmem:[#allocation2 + $0x2a8] sm:$0xff]  ;;  %v5114_v62 = vmax.f32 %v3857_v29, 0.0  ;;  %v5117_v49 = vmax.f32 %v3881_v19, 0.0  ;;  %v3965_v57 = vadd.f32 %v3653_v27, %v3853_v38 }
 0x172   : > { %v3916_v11 = vpop.f32.mrf.mxu0  ;;  %v1102_v52 = vld [vmem:[#allocation2 + $0x268] sm:$0xff]  ;;  %v1235_v5 = vmul.f32 %v1110_v12, %v5115_v45  ;;  %v3972_v12 = vadd.f32 %v3737_v16, %v3863_v46  ;;  %v4068_v14 = vadd.f32 %v3479_v21, %v3863_v46  ;;  %v5142_v21 = vld [vmem:[#allocation19_spill] sm:$0xff] }
 0x173   : > { %1311 = vmatpush.msrb.mxu2 %v1245_v32  ;;  %v1236_v15 = vmul.f32 %v1111_v60, %v5114_v62  ;;  %1351 = vmatpush.msra.mxu1 %v1246_v33  ;;  %v1097_v32 = vld [vmem:[#allocation2 + $0x240] sm:$0xff]  ;;  %v5116_v60 = vmax.f32 %v3874_v58, 0.0  ;;  %v3949_v33 = vadd.f32 %v3717_v9, %v3853_v38  ;;  %v1227_v41 = vmul.f32 %v1102_v52, %v5117_v49  ;;  %v1098_v6 = vld [vmem:[#allocation2 + $0x248] sm:$0xff] }
 0x174   : > { %v5120_v9 = vmax.f32 %v3885_v17, 0.0  ;;  %5122 = vst [vmem:[#allocation68_spill] sm:$0xff] %v3972_v12  ;;  %v3980_v27 = vld [vmem:[%s4931_s4 + $0x8] sm:$0xff]  ;;  %v5126_v58 = vmax.f32 %v3924_v30, 0.0  ;;  %v4082_v17 = vadd.f32 %v5142_v21, %v3863_v46 }
 0x175   : > { %2609 = vmatmul.msk.bf16.gmra.mxu0 %vm493_vm0, %v3365_v53  ;;  %1312 = vmatpush.msrb.mxu2 %v1240_v1  ;;  %v1231_v62 = vmul.f32 %v1106_v28, %v5116_v60  ;;  %v3956_v53 = vadd.f32 %v3754_v2, %v3863_v46  ;;  %v1092_v1 = vld [vmem:[#allocation2 + $0x218] sm:$0xff]  ;;  %v5119_v28 = vmax.f32 %v3891_v31, 0.0  ;;  %v5121_v2 = vmax.f32 %v3898_v43, 0.0  ;;  %v1082_v49 = vld [vmem:[#allocation2 + $0x1c8] sm:$0xff]  ;;  %5138 = vst [vmem:[#allocation73_spill] sm:$0xff] %v4068_v14 }
 0x176   : > { %1352 = vmatpush.msra.mxu1 %v1241_v18  ;;  %v1230_v60 = vmul.f32 %v1105_v26, %v5120_v9  ;;  %v1093_v18 = vld [vmem:[#allocation2 + $0x220] sm:$0xff]  ;;  %v5123_v26 = vmax.f32 %v3903_v54, 0.0 }
 0x177   : > { %5118 = vst [vmem:[#allocation67_spill] sm:$0xff] %v3956_v53  ;;  %v1228_v45 = vmul.f32 %v1103_v37, %v5119_v28  ;;  %1313 = vmatpush.msrb.mxu2 %v1235_v5  ;;  %v1222_v52 = vmul.f32 %v1097_v32, %v5121_v2  ;;  %v1087_v28 = vld [vmem:[#allocation2 + $0x1f0] sm:$0xff]  ;;  %v3982_v9 = vpop.f32.mrf.mxu2  ;;  %v5124_v32 = vmax.f32 %v3914_v25, 0.0  ;;  %v1088_v2 = vld [vmem:[#allocation2 + $0x1f8] sm:$0xff]  ;;  %v3997_v37 = vadd.f32 %v3669_v0, %v3863_v46 }
 0x178   : > { %1353 = vmatpush.msra.mxu1 %v1236_v15  ;;  %v1223_v5 = vmul.f32 %v1098_v6, %v5123_v26  ;;  %v3986_v15 = vadd.f32 %v3589_v24, %v3853_v38  ;;  %v3993_v26 = vpop.f32.mrf.mxu3  ;;  %v1218_v16 = vmul.f32 %v1093_v18, %v5126_v58  ;;  %v5127_v0 = vmax.f32 %v3933_v36, 0.0  ;;  %v1077_v24 = vld [vmem:[#allocation2 + $0x1a0] sm:$0xff] }
 0x179   : > { %1314 = vmatpush.msrb.mxu2 %v1230_v60  ;;  %v1217_v60 = vmul.f32 %v1092_v1, %v5124_v32  ;;  %5125 = vst [vmem:[#allocation69_spill] sm:$0xff] %v3997_v37  ;;  %v1083_v1 = vld [vmem:[#allocation2 + $0x1d0] sm:$0xff]  ;;  %v4015_v58 = vadd.f32 %v3587_v50, %v3863_v46  ;;  %v1072_v50 = vld [vmem:[#allocation2 + $0x178] sm:$0xff] }
 0x17a   : > { %1354 = vmatpush.msra.mxu1 %v1231_v62  ;;  %v3991_v6 = vpop.f32.mrf.mxu0  ;;  %2614 = vmatmul.msk.f32.vlgmr.msrb.gmra.mxu2 %vm1275_vm1, %v3980_v27  ;;  %v1212_v32 = vmul.f32 %v1087_v28, %v5127_v0  ;;  %v4980_v62 = vmax.f32 %v3986_v15, 0.0  ;;  %v1078_v28 = vld [vmem:[#allocation2 + $0x1a8] sm:$0xff]  ;;  %v4025_v0 = vadd.f32 %v3513_v23, %v3863_v46  ;;  %v4039_v23 = vadd.f32 %v3485_v40, %v3863_v46  ;;  %v1068_v40 = vld [vmem:[#allocation2 + $0x158] sm:$0xff] }
 0x17b   : > { %1359 = vmatpush.msra.mxu2 %v1227_v41  ;;  %v4006_v41 = vadd.f32 %v3530_v10, %v3853_v38  ;;  %2615 = vmatmul.msk.f32.vlgmr.msra.gmra.mxu1 %vm1275_vm1, %v3980_v27  ;;  %5128 = vst [vmem:[#allocation70_spill] sm:$0xff] %v4015_v58  ;;  %v5129_v10 = vmax.f32 %v3938_v59, 0.0  ;;  %v5140_v35 = vmax.f32 %v4015_v58, 0.0 }
 0x17c   : > { %1399 = vmatpush.msrb.mxu1 %v1228_v45  ;;  %5131 = vst [vmem:[#allocation71_spill] sm:$0xff] %v4025_v0 }
 0x17d   : > { %1360 = vmatpush.msra.mxu2 %v1222_v52  ;;  %v1213_v18 = vmul.f32 %v1088_v2, %v5129_v10  ;;  %v5130_v52 = vmax.f32 %v3949_v33, 0.0  ;;  %v4032_v2 = vadd.f32 %v3492_v22, %v3853_v38  ;;  %5134 = vst [vmem:[#allocation72_spill] sm:$0xff] %v4039_v23 }
 0x17e   : > { %1400 = vmatpush.msrb.mxu1 %v1223_v5  ;;  %v5132_v5 = vmax.f32 %v3956_v53, 0.0 }
 0x17f   : > { %v1207_v29 = vmul.f32 %v1082_v49, %v5130_v52  ;;  %1361 = vmatpush.msra.mxu2 %v1217_v60  ;;  %v5133_v49 = vmax.f32 %v3965_v57, 0.0  ;;  %v1073_v52 = vld [vmem:[#allocation2 + $0x180] sm:$0xff]  ;;  %v4044_v22 = vpop.f32.mrf.mxu2 }
 0x180   : > { %v1208_v45 = vmul.f32 %v1083_v1, %v5132_v5  ;;  %1401 = vmatpush.msrb.mxu1 %v1218_v16  ;;  %v5135_v16 = vmax.f32 %v3972_v12, 0.0  ;;  %v1067_v5 = vld [vmem:[#allocation2 + $0x150] sm:$0xff]  ;;  %v4054_v10 = vpop.f32.mrf.mxu3  ;;  %v1032_v12 = vld [vmem:[#allocation2 + $0x38] sm:$0xff] }
 0x181   : > { %1362 = vmatpush.msra.mxu2 %v1212_v32  ;;  %v1202_v60 = vmul.f32 %v1077_v24, %v5133_v49  ;;  %v4048_v32 = vadd.f32 %v3483_v39, %v3853_v38  ;;  %v1197_v24 = vmul.f32 %v1072_v50, %v4980_v62  ;;  %v5137_v50 = vmax.f32 %v4006_v41, 0.0 }
 0x182   : > { %1402 = vmatpush.msrb.mxu1 %v1213_v18  ;;  %v1203_v1 = vmul.f32 %v1078_v28, %v5135_v16  ;;  %v4052_v49 = vpop.f32.mrf.mxu0  ;;  %v5136_v28 = vmax.f32 %v3997_v37, 0.0  ;;  %v1062_v18 = vld [vmem:[#allocation2 + $0x128] sm:$0xff] }
 0x183   : > { %1363 = vmatpush.msra.mxu2 %v1207_v29  ;;  %v1192_v62 = vmul.f32 %v1067_v5, %v5137_v50  ;;  %v1063_v29 = vld [vmem:[#allocation2 + $0x130] sm:$0xff]  ;;  %v1058_v50 = vld [vmem:[#allocation2 + $0x108] sm:$0xff] }
 0x184   : > { %1403 = vmatpush.msrb.mxu1 %v1208_v45  ;;  %v1198_v16 = vmul.f32 %v1073_v52, %v5136_v28  ;;  %v5139_v52 = vld [vmem:[#allocation8_spill] sm:$0xff]  ;;  %v1193_v28 = vmul.f32 %v1068_v40, %v5140_v35  ;;  %v4088_v40 = vadd.f32 %v5145_v20, %v3853_v38  ;;  %v5150_v20 = vld [vmem:[#allocation14_spill] sm:$0xff] }
 0x185   : > { %1364 = vmatpush.msra.mxu2 %v1202_v60  ;;  %2610 = vmatmul.msk.bf16.gmra.mxu0 %vm493_vm0, %v5139_v52  ;;  %v5141_v60 = vld [vmem:[#allocation18_spill] sm:$0xff]  ;;  %5143 = vst [vmem:[#allocation8_spill] sm:$0xff] %v4082_v17  ;;  %v1057_v52 = vld [vmem:[#allocation2 + $0x100] sm:$0xff]  ;;  %v4104_v35 = vadd.f32 %v5150_v20, %v3853_v38  ;;  %v1047_v20 = vld [vmem:[#allocation2 + $0xb0] sm:$0xff] }
 0x186   : > { %1404 = vmatpush.msrb.mxu1 %v1203_v1  ;;  %v4077_v39 = vadd.f32 %v5141_v60, %v3853_v38  ;;  %v5144_v1 = vmax.f32 %v4025_v0, 0.0  ;;  %v5146_v60 = vmax.f32 %v4032_v2, 0.0  ;;  %v1042_v0 = vld [vmem:[#allocation2 + $0x88] sm:$0xff] }
 0x187   : > { %1365 = vmatpush.msra.mxu2 %v1197_v24  ;;  %v5147_v24 = vld [vmem:[#allocation17_spill] sm:$0xff]  ;;  %v4100_v34 = vpop.f32.mrf.mxu2 }
 0x188   : > { %1405 = vmatpush.msrb.mxu1 %v1198_v16  ;;  %v1188_v45 = vmul.f32 %v1063_v29, %v5144_v1  ;;  %v1187_v5 = vmul.f32 %v1062_v18, %v5146_v60  ;;  %v4095_v63 = vadd.f32 %v5147_v24, %v3863_v46  ;;  %v5149_v29 = vmax.f32 %v4039_v23, 0.0  ;;  %v1052_v1 = vld [vmem:[#allocation2 + $0xd8] sm:$0xff]  ;;  %v1053_v16 = vld [vmem:[#allocation2 + $0xe0] sm:$0xff] }
 0x189   : > { %1366 = vmatpush.msra.mxu2 %v1192_v62  ;;  %v5151_v60 = vmax.f32 %v4048_v32, 0.0  ;;  %v4120_v18 = vadd.f32 %v5153_v56, %v3853_v38  ;;  %v4127_v23 = vadd.f32 %v5155_v48, %v3863_v46  ;;  %v5157_v56 = vld [vmem:[#allocation9_spill] sm:$0xff]  ;;  %v5159_v48 = vld [vmem:[#allocation10_spill] sm:$0xff] }
 0x18a   : > { %5148 = vst [vmem:[#allocation18_spill] sm:$0xff] %v4095_v63  ;;  %1406 = vmatpush.msrb.mxu1 %v1193_v28  ;;  %v1183_v21 = vmul.f32 %v1058_v50, %v5149_v29  ;;  %v4107_v62 = vpop.f32.mrf.mxu0  ;;  %v4111_v28 = vpop.f32.mrf.mxu3  ;;  %v5152_v50 = vld [vmem:[#allocation15_spill] sm:$0xff]  ;;  %v4134_v58 = vadd.f32 %v5157_v56, %v3853_v38  ;;  %v4141_v37 = vadd.f32 %v5159_v48, %v3863_v46  ;;  %v1033_v56 = vld [vmem:[#allocation2 + $0x40] sm:$0xff] }
 0x18b   : > { %1367 = vmatpush.msra.mxu2 %v1187_v5  ;;  %v1182_v24 = vmul.f32 %v1057_v52, %v5151_v60  ;;  %v4115_v29 = vadd.f32 %v5152_v50, %v3863_v46  ;;  %v5154_v52 = vmax.f32 %v4061_v42, 0.0  ;;  %v1043_v5 = vld [vmem:[#allocation2 + $0x90] sm:$0xff]  ;;  %v1037_v50 = vld [vmem:[#allocation2 + $0x60] sm:$0xff] }
 0x18c   : > { %1407 = vmatpush.msrb.mxu1 %v1188_v45  ;;  %v5156_v45 = vmax.f32 %v4068_v14, 0.0  ;;  %v1038_v14 = vld [vmem:[#allocation2 + $0x68] sm:$0xff] }
 0x18d   : > { %1368 = vmatpush.msra.mxu2 %v1182_v24  ;;  %v1177_v60 = vmul.f32 %v1052_v1, %v5154_v52  ;;  %v5158_v1 = vmax.f32 %v4077_v39, 0.0 }
 0x18e   : > { %1408 = vmatpush.msrb.mxu1 %v1183_v21  ;;  %v1178_v55 = vmul.f32 %v1053_v16, %v5156_v45  ;;  %v5160_v16 = vmax.f32 %v4082_v17, 0.0  ;;  %v5165_v21 = vmax.f32 %v4120_v18, 0.0  ;;  %v5167_v17 = vmax.f32 %v4134_v58, 0.0 }
 0x18f   : > { %1369 = vmatpush.msra.mxu2 %v1177_v60  ;;  %v1172_v52 = vmul.f32 %v1047_v20, %v5158_v1  ;;  %v5161_v60 = vmax.f32 %v4088_v40, 0.0  ;;  %v5162_v1 = vmax.f32 %v4095_v63, 0.0  ;;  %v1028_v20 = vld [vmem:[#allocation2 + $0x18] sm:$0xff] }
 0x190   : > { %1409 = vmatpush.msrb.mxu1 %v1178_v55  ;;  %v1173_v45 = vmul.f32 %v1048_v3, %v5160_v16  ;;  %v743_v55 = vpop.f32.mrf.mxu2  ;;  %v1157_v63 = vmul.f32 %v1032_v12, %v5165_v21  ;;  %v5168_v12 = vmax.f32 %v3521_v8, 0.0 }
 0x191   : > { %1370 = vmatpush.msra.mxu2 %v1172_v52  ;;  %v1167_v24 = vmul.f32 %v1042_v0, %v5161_v60  ;;  %v1168_v48 = vmul.f32 %v1043_v5, %v5162_v1  ;;  %v5163_v52 = vmax.f32 %v4104_v35, 0.0  ;;  %v1027_v60 = vld [vmem:[#allocation2 + $0x10] sm:$0xff]  ;;  %v5164_v5 = vmax.f32 %v4115_v29, 0.0 }
 0x192   : > { %1410 = vmatpush.msrb.mxu1 %v1173_v45  ;;  %v4153_v3 = vpop.f32.mrf.mxu0  ;;  %v4157_v0 = vpop.f32.mrf.mxu3  ;;  %v4999_v45 = vmax.f32 %v4141_v37, 0.0  ;;  %v1152_v53 = vmul.f32 %v1027_v60, %v5167_v17  ;;  %v5170_v17 = vmax.f32 %v3518_v4, 0.0 }
 0x193   : > { %1371 = vmatpush.msra.mxu2 %v1167_v24  ;;  %v1162_v16 = vmul.f32 %v1037_v50, %v5163_v52  ;;  %v1163_v1 = vmul.f32 %v1038_v14, %v5164_v5  ;;  %v2988_v24 = vld [vmem:[%s3238_s9 + $0x50] sm:$0xff]  ;;  %v5166_v50 = vmax.f32 %v4127_v23, 0.0 }
 0x194   : > { %1411 = vmatpush.msrb.mxu1 %v1168_v48  ;;  %v1153_v48 = vmul.f32 %v1028_v20, %v4999_v45  ;;  %v5173_v20 = vld [vmem:[#allocation25_spill] sm:$0xff] }
 0x195   : > { %1372 = vmatpush.msra.mxu2 %v1162_v16  ;;  %2611 = vmatmul.msk.bf16.gmra.mxu0 %vm493_vm0, %v2988_v24  ;;  %v1158_v52 = vmul.f32 %v1033_v56, %v5166_v50  ;;  %v4187_v56 = vadd.f32 %v743_v55, %v3853_v38  ;;  %v5174_v60 = vmax.f32 %v5173_v20, 0.0  ;;  %v5177_v24 = vld [vmem:[#allocation27_spill] sm:$0xff]  ;;  %v4204_v55 = vadd.f32 %v4044_v22, %v3853_v38 }
 0x196   : > { %1412 = vmatpush.msrb.mxu1 %v1163_v1  ;;  %v1127_v22 = vld [vmem:[#allocation2 + $0x330] sm:$0xff] }
 0x197   : > { %1373 = vmatpush.msra.mxu2 %v1157_v63  ;;  %v5169_v63 = vmax.f32 %v3506_v51, 0.0  ;;  %5172 = vst [vmem:[#allocation19_spill] sm:$0xff] %v4187_v56  ;;  %v4195_v51 = vadd.f32 %v4100_v34, %v3853_v38  ;;  %v5002_v50 = vmax.f32 %v4187_v56, 0.0  ;;  %v2989_v34 = vld [vmem:[%s3238_s9 + $0x58] sm:$0xff]  ;;  %s2347_s9 = scalar_lea.sflag [#allocation4], %s287_s16 }
 0x198   : > { %1413 = vmatpush.msrb.mxu1 %v1158_v52  ;;  %v745_v14 = vpop.f32.mrf.mxu2  ;;  %5179 = vst [vmem:[#allocation14_spill] sm:$0xff] %v4204_v55 }
 0x199   : > { %1374 = vmatpush.msra.mxu2 %v1152_v53  ;;  %v5171_v53 = vmax.f32 %v3533_v13, 0.0  ;;  %5175 = vst [vmem:[#allocation16_spill] sm:$0xff] %v4195_v51  ;;  %v5178_v13 = vmax.f32 %v5177_v24, 0.0  ;;  %v4208_v52 = vadd.f32 %v745_v14, %v3853_v38  ;;  %v1142_v24 = vld [vmem:[#allocation2 + $0x3a8] sm:$0xff] }
 0x19a   : > { %1414 = vmatpush.msrb.mxu1 %v1153_v48  ;;  %1375 = vmatmul.f32.vlgmr.msra.gmra.mxu2 %v3773_v47  ;;  %v4175_v21 = vpop.f32.mrf.mxu0  ;;  %v4177_v16 = vpop.f32.mrf.mxu3 }
 0x19b   : > { %1415 = vmatmul.f32.vlgmr.msrb.gmra.mxu1 %v3773_v47  ;;  %5180 = vst [vmem:[#allocation15_spill] sm:$0xff] %v4208_v52  ;;  %v5003_v20 = vmax.f32 %v4208_v52, 0.0 }
 0x19c   : > { %1479 = vmatpush.msra.mxu1 %v5168_v12  ;;  %v1137_v12 = vld [vmem:[#allocation2 + $0x380] sm:$0xff] }
 0x19d   : > { %v1267_v45 = vmul.f32 %v1142_v24, %v5003_v20  ;;  %v1122_v24 = vld [vmem:[#allocation2 + $0x308] sm:$0xff]  ;;  %v5189_v20 = vld [vmem:[#allocation35_spill] sm:$0xff] }
 0x19e   : > { %1480 = vmatpush.msra.mxu1 %v5169_v63  ;;  %v1147_v63 = vld [vmem:[#allocation2 + $0x3d0] sm:$0xff]  ;;  %v5190_v56 = vmax.f32 %v5189_v20, 0.0 }
 0x19f   : > { %v5195_v20 = vld [vmem:[#allocation39_spill] sm:$0xff] }
 0x1a0   : > { %1481 = vmatpush.msra.mxu1 %v5170_v17  ;;  %v748_v8 = vpop.f32.mrf.mxu2  ;;  %v5181_v17 = vld [vmem:[#allocation29_spill] sm:$0xff] }
 0x1a1   : > { %v4198_v1 = vadd.f32 %v748_v8, %v3853_v38  ;;  %v4217_v8 = vadd.f32 %v3982_v9, %v3853_v38  ;;  %v1262_v9 = vmul.f32 %v1137_v12, %v5002_v50 }
 0x1a2   : > { %1482 = vmatpush.msra.mxu1 %v5171_v53  ;;  %v4191_v5 = vpop.f32.mrf.mxu0  ;;  %v816_v4 = vpop.f32.mrf.mxu3  ;;  %v5182_v53 = vmax.f32 %v5181_v17, 0.0 }
 0x1a3   : > { %5176 = vst [vmem:[#allocation17_spill] sm:$0xff] %v4198_v1  ;;  %v5000_v48 = vmax.f32 %v4198_v1, 0.0  ;;  %v5185_v1 = vld [vmem:[#allocation33_spill] sm:$0xff] }
 0x1a4   : > { %1483 = vmatpush.msra.mxu1 %v5174_v60  ;;  %v1132_v60 = vld [vmem:[#allocation2 + $0x358] sm:$0xff] }
 0x1a5   : > { %2612 = vmatmul.msk.bf16.gmra.mxu0 %vm493_vm0, %v2989_v34  ;;  %v1272_v14 = vmul.f32 %v1147_v63, %v5000_v48  ;;  %v5183_v34 = vld [vmem:[#allocation31_spill] sm:$0xff]  ;;  %v4236_v48 = vadd.f32 %v3836_v7, %v3853_v38 }
 0x1a6   : > { %1484 = vmatpush.msra.mxu1 %v5178_v13  ;;  %v4225_v13 = vadd.f32 %v3907_v44, %v3853_v38  ;;  %v5184_v17 = vmax.f32 %v5183_v34, 0.0  ;;  %v5186_v34 = vmax.f32 %v5185_v1, 0.0  ;;  %v5191_v1 = vmax.f32 %v4204_v55, 0.0  ;;  %v1117_v44 = vld [vmem:[#allocation2 + $0x2e0] sm:$0xff] }
 0x1a7   : > { %1386 = vmatpush.msra.mxu3 %v1272_v14  ;;  %v5188_v14 = vld [vmem:[#allocation50_spill] sm:$0xff]  ;;  %v5196_v55 = vmax.f32 %v5195_v20, 0.0 }
 0x1a8   : > { %1485 = vmatpush.msra.mxu1 %v5182_v53  ;;  %v750_v63 = vpop.f32.mrf.mxu2  ;;  %v5187_v53 = vmax.f32 %v4195_v51, 0.0  ;;  %v5010_v7 = vmax.f32 %v4225_v13, 0.0  ;;  %v5009_v51 = vmax.f32 %v4236_v48, 0.0 }
 0x1a9   : > { %1387 = vmatpush.msra.mxu3 %v1267_v45  ;;  %v4247_v63 = vadd.f32 %v5188_v14, %v3853_v38  ;;  %v1112_v38 = vld [vmem:[#allocation2 + $0x2b8] sm:$0xff] }
 0x1aa   : > { %1486 = vmatpush.msra.mxu1 %v5184_v17  ;;  %v4241_v17 = vpop.f32.mrf.mxu0  ;;  %v1257_v12 = vmul.f32 %v1132_v60, %v5187_v53  ;;  %v818_v50 = vpop.f32.mrf.mxu3  ;;  %v5192_v60 = vmax.f32 %v4217_v8, 0.0  ;;  %v5193_v53 = vld [vmem:[#allocation37_spill] sm:$0xff] }
 0x1ab   : > { %1388 = vmatpush.msra.mxu3 %v1262_v9  ;;  %v5194_v52 = vmax.f32 %v5193_v53, 0.0  ;;  %v5008_v14 = vmax.f32 %v4247_v63, 0.0  ;;  %v4265_v9 = vadd.f32 %v816_v4, %v3863_v46  ;;  %v4292_v20 = vadd.f32 %v818_v50, %v3863_v46 }
 0x1ac   : > { %1487 = vmatpush.msra.mxu1 %v5186_v34  ;;  %v1252_v34 = vmul.f32 %v1127_v22, %v5191_v1  ;;  %v1247_v45 = vmul.f32 %v1122_v24, %v5192_v60  ;;  %v1107_v22 = vld [vmem:[#allocation2 + $0x290] sm:$0xff]  ;;  %v1237_v24 = vmul.f32 %v1112_v38, %v5009_v51  ;;  %v5197_v1 = vld [vmem:[#allocation41_spill] sm:$0xff] }
 0x1ad   : > { %1389 = vmatpush.msra.mxu3 %v1257_v12  ;;  %v1232_v4 = vmul.f32 %v1107_v22, %v5008_v14  ;;  %v5201_v38 = vld [vmem:[#allocation11_spill] sm:$0xff] }
 0x1ae   : > { %1488 = vmatpush.msra.mxu1 %v5190_v56  ;;  %v1242_v56 = vmul.f32 %v1117_v44, %v5010_v7  ;;  %v4275_v44 = vadd.f32 %v4177_v16, %v3863_v46  ;;  %v5011_v16 = vmax.f32 %v4265_v9, 0.0  ;;  %v5204_v14 = vld [vmem:[#allocation47_spill] sm:$0xff] }
 0x1af   : > { %1390 = vmatpush.msra.mxu3 %v1252_v34  ;;  %v5199_v34 = vld [vmem:[#allocation43_spill] sm:$0xff]  ;;  %v5205_v51 = vmax.f32 %v5204_v14, 0.0 }
 0x1b0   : > { %1489 = vmatpush.msra.mxu1 %v5194_v52  ;;  %v5198_v52 = vmax.f32 %v5197_v1, 0.0  ;;  %v5200_v53 = vmax.f32 %v5199_v34, 0.0  ;;  %v1148_v34 = vld [vmem:[#allocation2 + $0x3d8] sm:$0xff] }
 0x1b1   : > { %1391 = vmatpush.msra.mxu3 %v1247_v45  ;;  %v4288_v45 = vadd.f32 %v4157_v0, %v3863_v46  ;;  %v1006_v0 = vmax.f32 %v4275_v44, 0.0  ;;  %v2883_v44 = vld [vmem:[%s4932_s5 + $0x98] sm:$0xff] }
 0x1b2   : > { %1490 = vmatpush.msra.mxu1 %v5196_v55  ;;  %v4271_v12 = vpop.f32.mrf.mxu0  ;;  %v821_v60 = vpop.f32.mrf.mxu3 }
 0x1b3   : > { %v4278_v55 = vadd.f32 %v821_v60, %v3863_v46  ;;  %1392 = vmatpush.msra.mxu3 %v1242_v56  ;;  %v1138_v60 = vld [vmem:[#allocation2 + $0x388] sm:$0xff]  ;;  %v4299_v56 = vadd.f32 %v4111_v28, %v3863_v46  ;;  %v5206_v28 = vmax.f32 %v3881_v19, 0.0  ;;  %v4325_v19 = vadd.f32 %v3993_v26, %v3863_v46 }
 0x1b4   : > { %1491 = vmatpush.msra.mxu1 %v5198_v52  ;;  %v5202_v52 = vld [vmem:[#allocation45_spill] sm:$0xff]  ;;  %v1263_v7 = vmul.f32 %v1138_v60, %v5011_v16  ;;  %v5207_v60 = vmax.f32 %v3898_v43, 0.0  ;;  %v1118_v26 = vld [vmem:[#allocation2 + $0x2e8] sm:$0xff] }
 0x1b5   : > { %2613 = vmatmul.msk.bf16.gmra.mxu0 %vm493_vm0, %v5201_v38  ;;  %v1021_v1 = vmax.f32 %v4278_v55, 0.0  ;;  %v5203_v22 = vmax.f32 %v5202_v52, 0.0  ;;  %1393 = vmatpush.msra.mxu3 %v1237_v24  ;;  %v1143_v38 = vld [vmem:[#allocation2 + $0x3b0] sm:$0xff]  ;;  %v1133_v52 = vld [vmem:[#allocation2 + $0x360] sm:$0xff]  ;;  %v4309_v24 = vadd.f32 %v4054_v10, %v3863_v46  ;;  %v996_v10 = vmax.f32 %v4299_v56, 0.0  ;;  %v2885_v55 = vld [vmem:[%s4932_s5 + $0xa8] sm:$0xff] }
 0x1b6   : > { %1492 = vmatpush.msra.mxu1 %v5200_v53  ;;  %v5012_v53 = vmax.f32 %v4292_v20, 0.0  ;;  %v986_v43 = vmax.f32 %v4325_v19, 0.0  ;;  %v2897_v56 = vld [vmem:[%s4932_s5 + $0x108] sm:$0xff]  ;;  %v2891_v19 = vld [vmem:[%s4932_s5 + $0xd8] sm:$0xff] }
 0x1b7   : > { %v1273_v50 = vmul.f32 %v1148_v34, %v1021_v1  ;;  %1394 = vmatpush.msra.mxu3 %v1232_v4 }
 0x1b8   : > { %1493 = vmatpush.msra.mxu1 %v5203_v22  ;;  %v1001_v22 = vmax.f32 %v4288_v45, 0.0  ;;  %v1268_v34 = vmul.f32 %v1143_v38, %v5012_v53  ;;  %2616 = vmatmul.msk.f32.vlgmr.msra.gmra.mxu3 %vm1275_vm1, %v3980_v27  ;;  %v1258_v38 = vmul.f32 %v1133_v52, %v1006_v0  ;;  %v4339_v53 = vadd.f32 %v3919_v61, %v3863_v46  ;;  %v2893_v45 = vld [vmem:[%s4932_s5 + $0xe8] sm:$0xff] }
 0x1b9   : > { %1426 = vmatpush.msrb.mxu3 %v1273_v50  ;;  %v1123_v50 = vld [vmem:[#allocation2 + $0x310] sm:$0xff] }
 0x1ba   : > { %1494 = vmatpush.msra.mxu1 %v5205_v51  ;;  %v4318_v14 = vpop.f32.mrf.mxu0  ;;  %v1128_v51 = vld [vmem:[#allocation2 + $0x338] sm:$0xff]  ;;  %v823_v4 = vpop.f32.mrf.mxu3  ;;  %v1248_v52 = vmul.f32 %v1123_v50, %v996_v10  ;;  %v981_v46 = vmax.f32 %v4339_v53, 0.0  ;;  %v5211_v50 = vmax.f32 %v3965_v57, 0.0  ;;  %v5215_v57 = vmax.f32 %v4048_v32, 0.0  ;;  %v2881_v53 = vld [vmem:[%s4932_s5 + $0x88] sm:$0xff] }
 0x1bb   : > { %1495 = vmatmul.f32.vlgmr.msra.gmra.mxu1 %v3773_v47  ;;  %1427 = vmatpush.msrb.mxu3 %v1268_v34  ;;  %v5208_v4 = vmax.f32 %v3914_v25, 0.0  ;;  %v1253_v16 = vmul.f32 %v1128_v51, %v1001_v22  ;;  %v5209_v34 = vmax.f32 %v3933_v36, 0.0  ;;  %v1113_v25 = vld [vmem:[#allocation2 + $0x2c0] sm:$0xff]  ;;  %v5212_v36 = vmax.f32 %v3986_v15, 0.0 }
 0x1bc   : > { %1559 = vmatpush.msrb.mxu1 %v5206_v28  ;;  %v991_v28 = vmax.f32 %v4309_v24, 0.0  ;;  %v1238_v61 = vmul.f32 %v1113_v25, %v986_v43  ;;  %v5216_v15 = vmax.f32 %v4061_v42, 0.0  ;;  %v5220_v25 = vmax.f32 %v4120_v18, 0.0  ;;  %v2892_v24 = vld [vmem:[%s4932_s5 + $0xe0] sm:$0xff] }
 0x1bd   : > { %1428 = vmatpush.msrb.mxu3 %v1263_v7  ;;  %v5210_v7 = vmax.f32 %v3949_v33, 0.0 }
 0x1be   : > { %1560 = vmatpush.msrb.mxu1 %v5207_v60  ;;  %v1243_v60 = vmul.f32 %v1118_v26, %v991_v28 }
 0x1bf   : > { %1429 = vmatpush.msrb.mxu3 %v1258_v38  ;;  %v1108_v38 = vld [vmem:[#allocation2 + $0x298] sm:$0xff] }
 0x1c0   : > { %1561 = vmatpush.msrb.mxu1 %v5208_v4  ;;  %v5213_v4 = vmax.f32 %v4006_v41, 0.0  ;;  %v1233_v33 = vmul.f32 %v1108_v38, %v981_v46  ;;  %v5217_v41 = vmax.f32 %v4077_v39, 0.0  ;;  %v2990_v39 = vld [vmem:[%s4929_s2] sm:$0x1f]  ;;  %v1099_v38 = vld [vmem:[#allocation2 + $0x250] sm:$0xff] }
 0x1c1   : > { %1430 = vmatpush.msrb.mxu3 %v1253_v16  ;;  %v5214_v16 = vmax.f32 %v4032_v2, 0.0  ;;  %v5219_v2 = vmax.f32 %v4104_v35, 0.0 }
 0x1c2   : > { %1562 = vmatpush.msrb.mxu1 %v5209_v34  ;;  %v859_v51 = vpop.f32.mrf.mxu0 }
 0x1c3   : > { %1431 = vmatpush.msrb.mxu3 %v1248_v52  ;;  %v5218_v52 = vmax.f32 %v4088_v40, 0.0  ;;  %v4383_v40 = vperm.slane %v2990_v39, 4 }
 0x1c4   : > { %1563 = vmatpush.msrb.mxu1 %v5210_v7 }
 0x1c5   : > { %1432 = vmatpush.msrb.mxu3 %v1243_v60  ;;  %v5221_v60 = vmax.f32 %v4134_v58, 0.0  ;;  %v855_v39 = vadd.f32 %v4271_v12, %v4383_v40  ;;  %v1069_v12 = vld [vmem:[#allocation2 + $0x160] sm:$0xff] }
 0x1c6   : > { %1564 = vmatpush.msrb.mxu1 %v5211_v50  ;;  %v1104_v50 = vld [vmem:[#allocation2 + $0x278] sm:$0xff] }
 0x1c7   : > { %1433 = vmatpush.msrb.mxu3 %v1238_v61 }
 0x1c8   : > { %1565 = vmatpush.msrb.mxu1 %v5212_v36 }
 0x1c9   : > { %1434 = vmatpush.msrb.mxu3 %v1233_v33 }
 0x1ca   : > { %1566 = vmatpush.msrb.mxu1 %v5213_v4  ;;  %v861_v26 = vpop.f32.mrf.mxu0  ;;  %2617 = vmatmul.msk.f32.vlgmr.msrb.gmra.mxu3 %vm1275_vm1, %v3980_v27 }
 0x1cb   : > { %v862_v4 = vadd.f32 %v861_v26, %v4383_v40  ;;  %v857_v26 = vadd.f32 %v4318_v14, %v4383_v40  ;;  %v1074_v14 = vld [vmem:[#allocation2 + $0x188] sm:$0xff] }
 0x1cc   : > { %1567 = vmatpush.msrb.mxu1 %v5214_v16 }
 0x1ce   : > { %1568 = vmatpush.msrb.mxu1 %v5215_v57  ;;  %v1094_v57 = vld [vmem:[#allocation2 + $0x228] sm:$0xff] }
 0x1d0   : > { %1569 = vmatpush.msrb.mxu1 %v5216_v15  ;;  %v2903_v15 = vld [vmem:[%s4932_s5 + $0x138] sm:$0xff] }
 0x1d1   : > { %2061 = vmatpush.bf16.msra.mxu0 %v2903_v15 }
 0x1d2   : > { %1570 = vmatpush.msrb.mxu1 %v5217_v41  ;;  %v864_v34 = vpop.f32.mrf.mxu0  ;;  %v860_v41 = vadd.f32 %v859_v51, %v4383_v40 }
 0x1d3   : > { %v865_v58 = vadd.f32 %v864_v34, %v4383_v40  ;;  %v1089_v34 = vld [vmem:[#allocation2 + $0x200] sm:$0xff] }
 0x1d4   : > { %1571 = vmatpush.msrb.mxu1 %v5218_v52  ;;  %v952_v51 = vmax.f32 %v860_v41, 0.0  ;;  %v1059_v41 = vld [vmem:[#allocation2 + $0x110] sm:$0xff] }
 0x1d5   : > { %v962_v52 = vmax.f32 %v865_v58, 0.0  ;;  %v850_v58 = vadd.f32 %v4191_v5, %v4383_v40 }
 0x1d6   : > { %1572 = vmatpush.msrb.mxu1 %v5219_v2 }
 0x1d7   : > { %v932_v15 = vmax.f32 %v850_v58, 0.0  ;;  %v1034_v58 = vld [vmem:[#allocation2 + $0x48] sm:$0xff] }
 0x1d8   : > { %1573 = vmatpush.msrb.mxu1 %v5220_v25 }
 0x1da   : > { %1574 = vmatpush.msrb.mxu1 %v5221_v60  ;;  %v866_v42 = vpop.f32.mrf.mxu0  ;;  %v957_v60 = vmax.f32 %v862_v4, 0.0  ;;  %v847_v4 = vadd.f32 %v4175_v21, %v4383_v40  ;;  %v1054_v21 = vld [vmem:[#allocation2 + $0xe8] sm:$0xff] }
 0x1db   : > { %1575 = vmatmul.f32.vlgmr.msrb.gmra.mxu1 %v3773_v47  ;;  %v867_v61 = vadd.f32 %v866_v42, %v4383_v40 }
 0x1dd   : > { %v967_v33 = vmax.f32 %v867_v61, 0.0  ;;  %v852_v61 = vadd.f32 %v4241_v17, %v4383_v40 }
 0x1df   : > { %v1219_v42 = vmul.f32 %v1094_v57, %v967_v33  ;;  %v845_v57 = vadd.f32 %v4153_v3, %v4383_v40  ;;  %v1049_v3 = vld [vmem:[#allocation2 + $0xc0] sm:$0xff] }
 0x1e2   : > { %v869_v32 = vpop.f32.mrf.mxu0 }
 0x1e3   : > { %v870_v7 = vadd.f32 %v869_v32, %v4383_v40  ;;  %v1084_v32 = vld [vmem:[#allocation2 + $0x1d8] sm:$0xff] }
 0x1e5   : > { %v972_v36 = vmax.f32 %v870_v7, 0.0  ;;  %v1214_v7 = vmul.f32 %v1089_v34, %v962_v52 }
 0x1e7   : > { %v1224_v2 = vmul.f32 %v1099_v38, %v972_v36 }
 0x1ea   : > { %v871_v35 = vpop.f32.mrf.mxu0 }
 0x1eb   : > { %v872_v18 = vadd.f32 %v871_v35, %v4383_v40  ;;  %v1079_v35 = vld [vmem:[#allocation2 + $0x1b0] sm:$0xff] }
 0x1ed   : > { %v977_v47 = vmax.f32 %v872_v18, 0.0  ;;  %v947_v18 = vmax.f32 %v857_v26, 0.0  ;;  %v840_v26 = vadd.f32 %v4052_v49, %v4383_v40 }
 0x1ef   : > { %v1229_v16 = vmul.f32 %v1104_v50, %v977_v47  ;;  %1639 = vmatpush.msra.mxu1 %v977_v47  ;;  %v1209_v50 = vmul.f32 %v1084_v32, %v957_v60  ;;  %v1204_v47 = vmul.f32 %v1079_v35, %v952_v51  ;;  %v1199_v17 = vmul.f32 %v1074_v14, %v947_v18 }
 0x1f0   : > { %v835_v35 = vadd.f32 %v3916_v11, %v4383_v40 }
 0x1f1   : > { %1439 = vmatpush.msrb.mxu2 %v1229_v16  ;;  %1640 = vmatpush.msra.mxu1 %v972_v36  ;;  %v942_v36 = vmax.f32 %v855_v39, 0.0  ;;  %v1064_v16 = vld [vmem:[#allocation2 + $0x138] sm:$0xff]  ;;  %v837_v39 = vadd.f32 %v3991_v6, %v4383_v40 }
 0x1f2   : > { %v4394_v25 = vpop.f32.mrf.mxu0 }
 0x1f3   : > { %1440 = vmatpush.msrb.mxu2 %v1224_v2  ;;  %1641 = vmatpush.msra.mxu1 %v967_v33  ;;  %v937_v33 = vmax.f32 %v852_v61, 0.0  ;;  %v1194_v5 = vmul.f32 %v1069_v12, %v942_v36  ;;  %v927_v2 = vmax.f32 %v847_v4, 0.0  ;;  %v912_v61 = vmax.f32 %v840_v26, 0.0  ;;  %v5230_v26 = vld [vmem:[#allocation24_spill] sm:$0xff] }
 0x1f5   : > { %1441 = vmatpush.msrb.mxu2 %v1219_v42  ;;  %1642 = vmatpush.msra.mxu1 %v962_v52  ;;  %v842_v52 = vadd.f32 %v4107_v62, %v4383_v40  ;;  %v1189_v34 = vmul.f32 %v1064_v16, %v937_v33  ;;  %v1184_v42 = vmul.f32 %v1059_v41, %v932_v15  ;;  %v5222_v16 = vld [vmem:[#allocation23_spill] sm:$0xff] }
 0x1f6   : > { %v1179_v62 = vmul.f32 %v1054_v21, %v927_v2 }
 0x1f7   : > { %1442 = vmatpush.msrb.mxu2 %v1214_v7  ;;  %1643 = vmatpush.msra.mxu1 %v957_v60  ;;  %v922_v60 = vmax.f32 %v845_v57, 0.0  ;;  %v1044_v7 = vld [vmem:[#allocation2 + $0x98] sm:$0xff]  ;;  %v5223_v57 = vmax.f32 %v5222_v16, 0.0 }
 0x1f9   : > { %1443 = vmatpush.msrb.mxu2 %v1209_v50  ;;  %1644 = vmatpush.msra.mxu1 %v952_v51  ;;  %v917_v51 = vmax.f32 %v842_v52, 0.0  ;;  %v1174_v49 = vmul.f32 %v1049_v3, %v922_v60  ;;  %v907_v50 = vmax.f32 %v837_v39, 0.0  ;;  %v5226_v52 = vld [vmem:[#allocation21_spill] sm:$0xff]  ;;  %v5232_v3 = vld [vmem:[#allocation26_spill] sm:$0xff] }
 0x1fa   : > { %v4404_v38 = vpop.f32.mrf.mxu0  ;;  %v5233_v39 = vmax.f32 %v5232_v3, 0.0 }
 0x1fb   : > { %1444 = vmatpush.msrb.mxu2 %v1204_v47  ;;  %1645 = vmatpush.msra.mxu1 %v947_v18  ;;  %v1039_v18 = vld [vmem:[#allocation2 + $0x70] sm:$0xff]  ;;  %v1169_v14 = vmul.f32 %v1044_v7, %v917_v51  ;;  %v1029_v47 = vld [vmem:[#allocation2 + $0x20] sm:$0xff]  ;;  %v1159_v4 = vmul.f32 %v1034_v58, %v907_v50  ;;  %v5236_v7 = vld [vmem:[#allocation30_spill] sm:$0xff] }
 0x1fc   : > { %v1164_v6 = vmul.f32 %v1039_v18, %v912_v61  ;;  %v2901_v58 = vld [vmem:[%s4932_s5 + $0x128] sm:$0xff] }
 0x1fd   : > { %1445 = vmatpush.msrb.mxu2 %v1199_v17  ;;  %1646 = vmatpush.msra.mxu1 %v942_v36  ;;  %v902_v36 = vmax.f32 %v835_v35, 0.0  ;;  %v2902_v17 = vld [vmem:[%s4932_s5 + $0x130] sm:$0xff]  ;;  %v5237_v35 = vmax.f32 %v5236_v7, 0.0 }
 0x1fe   : > { %2062 = vmatpush.bf16.msra.mxu0 %v2902_v17 }
 0x1ff   : > { %1446 = vmatpush.msrb.mxu2 %v1194_v5  ;;  %1647 = vmatpush.msra.mxu1 %v937_v33  ;;  %v1154_v11 = vmul.f32 %v1029_v47, %v902_v36  ;;  %v4423_v33 = vld [vmem:[%s4931_s4] sm:$0xff]  ;;  %v5224_v5 = vld [vmem:[#allocation20_spill] sm:$0xff]  ;;  %v5244_v47 = vld [vmem:[#allocation38_spill] sm:$0xff] }
 0x200   : > { %v5225_v41 = vmax.f32 %v5224_v5, 0.0 }
 0x201   : > { %1447 = vmatpush.msrb.mxu2 %v1189_v34  ;;  %1648 = vmatpush.msra.mxu1 %v932_v15  ;;  %v5228_v34 = vld [vmem:[#allocation22_spill] sm:$0xff] }
 0x202   : > { %v4414_v32 = vpop.f32.mrf.mxu0  ;;  %v5229_v21 = vmax.f32 %v5228_v34, 0.0  ;;  %2063 = vmatpush.bf16.msra.mxu0 %v2901_v58 }
 0x203   : > { %1448 = vmatpush.msrb.mxu2 %v1184_v42  ;;  %1649 = vmatpush.msra.mxu1 %v927_v2  ;;  %v5227_v2 = vmax.f32 %v5226_v52, 0.0 }
 0x205   : > { %1449 = vmatpush.msrb.mxu2 %v1179_v62  ;;  %1650 = vmatpush.msra.mxu1 %v922_v60  ;;  %v5231_v60 = vmax.f32 %v5230_v26, 0.0 }
 0x207   : > { %1450 = vmatpush.msrb.mxu2 %v1174_v49  ;;  %1651 = vmatpush.msra.mxu1 %v917_v51  ;;  %v5234_v51 = vld [vmem:[#allocation28_spill] sm:$0xff] }
 0x208   : > { %v5235_v62 = vmax.f32 %v5234_v51, 0.0 }
 0x209   : > { %1451 = vmatpush.msrb.mxu2 %v1169_v14  ;;  %1652 = vmatpush.msra.mxu1 %v912_v61  ;;  %v5238_v61 = vld [vmem:[#allocation32_spill] sm:$0xff] }
 0x20a   : > { %v881_v12 = vpop.f32.mrf.mxu0  ;;  %v5239_v49 = vmax.f32 %v5238_v61, 0.0 }
 0x20b   : > { %1452 = vmatpush.msrb.mxu2 %v1164_v6  ;;  %1653 = vmatpush.msra.mxu1 %v907_v50  ;;  %v5240_v50 = vld [vmem:[#allocation34_spill] sm:$0xff] }
 0x20c   : > { %v5241_v14 = vmax.f32 %v5240_v50, 0.0 }
 0x20d   : > { %1453 = vmatpush.msrb.mxu2 %v1159_v4  ;;  %1654 = vmatpush.msra.mxu1 %v902_v36  ;;  %v5242_v36 = vld [vmem:[#allocation36_spill] sm:$0xff]  ;;  %v5245_v4 = vmax.f32 %v5244_v47, 0.0 }
 0x20e   : > { %1655 = vmatmul.f32.vlgmr.msra.gmra.mxu1 %v4423_v33  ;;  %v5243_v6 = vmax.f32 %v5242_v36, 0.0  ;;  %v4497_v36 = vadd.f32 %v881_v12, %v4383_v40 }
 0x20f   : > { %1454 = vmatpush.msrb.mxu2 %v1154_v11  ;;  %v5246_v11 = vld [vmem:[#allocation40_spill] sm:$0xff] }
 0x210   : > { %1455 = vmatmul.f32.vlgmr.msrb.gmra.mxu2 %v4423_v33  ;;  %v5247_v17 = vmax.f32 %v5246_v11, 0.0 }
 0x211   : > { %1519 = vmatpush.msra.mxu2 %v5223_v57  ;;  %v5248_v57 = vld [vmem:[#allocation42_spill] sm:$0xff] }
 0x212   : > { %v884_v15 = vpop.f32.mrf.mxu0  ;;  %v5249_v5 = vmax.f32 %v5248_v57, 0.0  ;;  %v5262_v57 = vld [vmem:[#allocation69_spill] sm:$0xff] }
 0x213   : > { %1520 = vmatpush.msra.mxu2 %v5225_v41  ;;  %v5250_v41 = vld [vmem:[#allocation44_spill] sm:$0xff] }
 0x214   : > { %v5251_v52 = vmax.f32 %v5250_v41, 0.0  ;;  %v1129_v41 = vld [vmem:[#allocation2 + $0x340] sm:$0xff] }
 0x215   : > { %1521 = vmatpush.msra.mxu2 %v5227_v2  ;;  %v5252_v2 = vld [vmem:[#allocation46_spill] sm:$0xff] }
 0x216   : > { %v5253_v34 = vmax.f32 %v5252_v2, 0.0  ;;  %v997_v2 = vmax.f32 %v4497_v36, 0.0  ;;  %v2888_v36 = vld [vmem:[%s4932_s5 + $0xc0] sm:$0xff] }
 0x217   : > { %1522 = vmatpush.msra.mxu2 %v5229_v21  ;;  %v5254_v21 = vmax.f32 %v3891_v31, 0.0  ;;  %v1149_v31 = vld [vmem:[#allocation2 + $0x3e0] sm:$0xff] }
 0x219   : > { %1523 = vmatpush.msra.mxu2 %v5231_v60  ;;  %v5255_v60 = vmax.f32 %v3903_v54, 0.0  ;;  %v5257_v54 = vmax.f32 %v3938_v59, 0.0 }
 0x21a   : > { %v886_v42 = vpop.f32.mrf.mxu0 }
 0x21b   : > { %1524 = vmatpush.msra.mxu2 %v5233_v39  ;;  %v4482_v7 = vadd.f32 %v886_v42, %v4383_v40  ;;  %v1139_v42 = vld [vmem:[#allocation2 + $0x390] sm:$0xff] }
 0x21d   : > { %1525 = vmatpush.msra.mxu2 %v5235_v62  ;;  %v5256_v62 = vmax.f32 %v3924_v30, 0.0 }
 0x21f   : > { %1526 = vmatpush.msra.mxu2 %v5237_v35 }
 0x221   : > { %1527 = vmatpush.msra.mxu2 %v5239_v49  ;;  %v1144_v49 = vld [vmem:[#allocation2 + $0x3b8] sm:$0xff] }
 0x222   : > { %v889_v18 = vpop.f32.mrf.mxu0 }
 0x223   : > { %1528 = vmatpush.msra.mxu2 %v5241_v14  ;;  %v4474_v39 = vadd.f32 %v889_v18, %v4383_v40  ;;  %v4489_v18 = vadd.f32 %v884_v15, %v4383_v40  ;;  %v5258_v14 = vld [vmem:[#allocation67_spill] sm:$0xff]  ;;  %v5260_v15 = vld [vmem:[#allocation68_spill] sm:$0xff] }
 0x224   : > { %v5259_v58 = vmax.f32 %v5258_v14, 0.0  ;;  %v5261_v47 = vmax.f32 %v5260_v15, 0.0 }
 0x225   : > { %1529 = vmatpush.msra.mxu2 %v5243_v6  ;;  %v1012_v50 = vmax.f32 %v4474_v39, 0.0  ;;  %v1007_v6 = vmax.f32 %v4482_v7, 0.0  ;;  %v2889_v7 = vld [vmem:[%s4932_s5 + $0xc8] sm:$0xff] }
 0x227   : > { %1530 = vmatpush.msra.mxu2 %v5245_v4  ;;  %v1134_v4 = vld [vmem:[#allocation2 + $0x368] sm:$0xff]  ;;  %v1264_v12 = vmul.f32 %v1139_v42, %v1012_v50  ;;  %v5268_v42 = vld [vmem:[#allocation72_spill] sm:$0xff] }
 0x229   : > { %1531 = vmatpush.msra.mxu2 %v5247_v17  ;;  %v4506_v17 = vadd.f32 %v4414_v32, %v4383_v40  ;;  %v1259_v32 = vmul.f32 %v1134_v4, %v1007_v6 }
 0x22a   : > { %v891_v16 = vpop.f32.mrf.mxu0 }
 0x22b   : > { %1532 = vmatpush.msra.mxu2 %v5249_v5  ;;  %v4469_v26 = vadd.f32 %v891_v16, %v4383_v40  ;;  %v1002_v16 = vmax.f32 %v4489_v18, 0.0  ;;  %v5263_v5 = vmax.f32 %v5262_v57, 0.0  ;;  %v5272_v57 = vld [vmem:[#allocation8_spill] sm:$0xff] }
 0x22d   : > { %1533 = vmatpush.msra.mxu2 %v5251_v52  ;;  %v1017_v35 = vmax.f32 %v4469_v26, 0.0  ;;  %v4515_v52 = vadd.f32 %v4404_v38, %v4383_v40  ;;  %v992_v38 = vmax.f32 %v4506_v17, 0.0  ;;  %v2890_v26 = vld [vmem:[%s4932_s5 + $0xd0] sm:$0xff]  ;;  %v2896_v17 = vld [vmem:[%s4932_s5 + $0x100] sm:$0xff] }
 0x22f   : > { %1534 = vmatpush.msra.mxu2 %v5253_v34  ;;  %v1269_v59 = vmul.f32 %v1144_v49, %v1017_v35  ;;  %v5264_v34 = vld [vmem:[#allocation70_spill] sm:$0xff]  ;;  %v987_v14 = vmax.f32 %v4515_v52, 0.0 }
 0x230   : > { %1535 = vmatmul.f32.vlgmr.msra.gmra.mxu2 %v4423_v33  ;;  %v2877_v52 = vld [vmem:[%s4932_s5 + $0x68] sm:$0xff] }
 0x231   : > { %1599 = vmatpush.msrb.mxu2 %v5254_v21  ;;  %v5265_v21 = vmax.f32 %v5264_v34, 0.0 }
 0x232   : > { %v894_v3 = vpop.f32.mrf.mxu0 }
 0x233   : > { %1600 = vmatpush.msrb.mxu2 %v5255_v60  ;;  %v4477_v51 = vadd.f32 %v894_v3, %v4383_v40  ;;  %v1124_v60 = vld [vmem:[#allocation2 + $0x318] sm:$0xff]  ;;  %v2900_v3 = vld [vmem:[%s4932_s5 + $0x120] sm:$0xff] }
 0x234   : > { %2064 = vmatpush.bf16.msra.mxu0 %v2900_v3 }
 0x235   : > { %1601 = vmatpush.msrb.mxu2 %v5256_v62  ;;  %v1022_v61 = vmax.f32 %v4477_v51, 0.0  ;;  %v4527_v62 = vadd.f32 %v4394_v25, %v4383_v40  ;;  %v5269_v40 = vmax.f32 %v5268_v42, 0.0  ;;  %v1114_v25 = vld [vmem:[#allocation2 + $0x2c8] sm:$0xff]  ;;  %v5285_v42 = vld [vmem:[#allocation56_spill] sm:$0xff] }
 0x237   : > { %1602 = vmatpush.msrb.mxu2 %v5257_v54  ;;  %v1274_v30 = vmul.f32 %v1149_v31, %v1022_v61  ;;  %v1254_v31 = vmul.f32 %v1129_v41, %v1002_v16  ;;  %v5266_v54 = vld [vmem:[#allocation71_spill] sm:$0xff] }
 0x238   : > { %v5267_v49 = vmax.f32 %v5266_v54, 0.0  ;;  %v5280_v54 = vld [vmem:[#allocation49_spill] sm:$0xff] }
 0x239   : > { %1603 = vmatpush.msrb.mxu2 %v5259_v58  ;;  %1466 = vmatpush.msra.mxu3 %v1274_v30  ;;  %v1119_v30 = vld [vmem:[#allocation2 + $0x2f0] sm:$0xff]  ;;  %v1249_v58 = vmul.f32 %v1124_v60, %v997_v2  ;;  %v5277_v60 = vld [vmem:[#allocation53_spill] sm:$0xff] }
 0x23a   : > { %v896_v11 = vpop.f32.mrf.mxu0  ;;  %v1244_v15 = vmul.f32 %v1119_v30, %v992_v38  ;;  %v5278_v3 = vmax.f32 %v5277_v60, 0.0  ;;  %v5282_v30 = vmax.f32 %v4141_v37, 0.0  ;;  %v5301_v60 = vld [vmem:[#allocation51_spill] sm:$0xff] }
 0x23b   : > { %1604 = vmatpush.msrb.mxu2 %v5261_v47  ;;  %1467 = vmatpush.msra.mxu3 %v1269_v59  ;;  %v982_v59 = vmax.f32 %v4527_v62, 0.0  ;;  %v5270_v47 = vld [vmem:[#allocation73_spill] sm:$0xff]  ;;  %v2875_v62 = vld [vmem:[%s4932_s5 + $0x58] sm:$0xff] }
 0x23c   : > { %v5271_v4 = vmax.f32 %v5270_v47, 0.0  ;;  %v1109_v11 = vld [vmem:[#allocation2 + $0x2a0] sm:$0xff]  ;;  %v5289_v47 = vld [vmem:[#allocation60_spill] sm:$0xff] }
 0x23d   : > { %1605 = vmatpush.msrb.mxu2 %v5263_v5  ;;  %1468 = vmatpush.msra.mxu3 %v1264_v12  ;;  %v1239_v12 = vmul.f32 %v1114_v25, %v987_v14  ;;  %v5273_v5 = vmax.f32 %v5272_v57, 0.0  ;;  %v1234_v41 = vmul.f32 %v1109_v11, %v982_v59  ;;  %v5287_v25 = vld [vmem:[#allocation58_spill] sm:$0xff] }
 0x23e   : > { %v5295_v57 = vld [vmem:[#allocation66_spill] sm:$0xff] }
 0x23f   : > { %1606 = vmatpush.msrb.mxu2 %v5265_v21  ;;  %1469 = vmatpush.msra.mxu3 %v1259_v32  ;;  %v5274_v32 = vld [vmem:[#allocation18_spill] sm:$0xff]  ;;  %v5276_v21 = vmax.f32 %v4115_v29, 0.0 }
 0x240   : > { %v5275_v34 = vmax.f32 %v5274_v32, 0.0 }
 0x241   : > { %1607 = vmatpush.msrb.mxu2 %v5267_v49  ;;  %1470 = vmatpush.msra.mxu3 %v1254_v31  ;;  %v5279_v31 = vmax.f32 %v4127_v23, 0.0  ;;  %v5281_v49 = vmax.f32 %v5280_v54, 0.0  ;;  %v5290_v23 = vmax.f32 %v5289_v47, 0.0 }
 0x243   : > { %1608 = vmatpush.msrb.mxu2 %v5269_v40  ;;  %1471 = vmatpush.msra.mxu3 %v1249_v58  ;;  %v5283_v58 = vld [vmem:[#allocation52_spill] sm:$0xff]  ;;  %v5286_v40 = vmax.f32 %v5285_v42, 0.0 }
 0x244   : > { %v5284_v29 = vmax.f32 %v5283_v58, 0.0 }
 0x245   : > { %1609 = vmatpush.msrb.mxu2 %v5271_v4  ;;  %1472 = vmatpush.msra.mxu3 %v1244_v15  ;;  %v5288_v15 = vmax.f32 %v5287_v25, 0.0  ;;  %v5291_v4 = vld [vmem:[#allocation62_spill] sm:$0xff] }
 0x246   : > { %v5292_v11 = vmax.f32 %v5291_v4, 0.0  ;;  %v5313_v4 = vld [vmem:[#allocation65_spill] sm:$0xff] }
 0x247   : > { %1610 = vmatpush.msrb.mxu2 %v5273_v5  ;;  %1473 = vmatpush.msra.mxu3 %v1239_v12  ;;  %v5293_v12 = vld [vmem:[#allocation64_spill] sm:$0xff]  ;;  %v5296_v5 = vmax.f32 %v5295_v57, 0.0  ;;  %v5317_v57 = vld [vmem:[#allocation15_spill] sm:$0xff] }
 0x248   : > { %v5294_v37 = vmax.f32 %v5293_v12, 0.0  ;;  %v5315_v12 = vld [vmem:[#allocation17_spill] sm:$0xff] }
 0x249   : > { %1611 = vmatpush.msrb.mxu2 %v5275_v34  ;;  %1474 = vmatpush.msra.mxu3 %v1234_v41  ;;  %v5297_v41 = vld [vmem:[#allocation55_spill] sm:$0xff]  ;;  %v5299_v34 = vld [vmem:[#allocation48_spill] sm:$0xff] }
 0x24a   : > { %2618 = vmatmul.msk.f32.vlgmr.msra.gmra.mxu3 %vm1275_vm1, %v3980_v27  ;;  %v5298_v32 = vmax.f32 %v5297_v41, 0.0  ;;  %v2868_v41 = vld [vmem:[%s4932_s5 + $0x20] sm:$0xff] }
 0x24b   : > { %1612 = vmatpush.msrb.mxu2 %v5276_v21  ;;  %1506 = vmatpush.msrb.mxu3 %v5278_v3  ;;  %v5300_v21 = vmax.f32 %v5299_v34, 0.0  ;;  %v5302_v3 = vmax.f32 %v5301_v60, 0.0 }
 0x24d   : > { %1613 = vmatpush.msrb.mxu2 %v5279_v31  ;;  %1507 = vmatpush.msrb.mxu3 %v5281_v49  ;;  %v5303_v31 = vld [vmem:[#allocation54_spill] sm:$0xff]  ;;  %v2871_v49 = vld [vmem:[%s4932_s5 + $0x38] sm:$0xff] }
 0x24e   : > { %v5304_v54 = vmax.f32 %v5303_v31, 0.0  ;;  %v2867_v31 = vld [vmem:[%s4932_s5 + $0x18] sm:$0xff] }
 0x24f   : > { %1614 = vmatpush.msrb.mxu2 %v5282_v30  ;;  %1508 = vmatpush.msrb.mxu3 %v5284_v29  ;;  %v5305_v30 = vld [vmem:[#allocation57_spill] sm:$0xff]  ;;  %v5307_v29 = vld [vmem:[#allocation59_spill] sm:$0xff] }
 0x250   : > { %1615 = vmatmul.f32.vlgmr.msrb.gmra.mxu2 %v4423_v33  ;;  %v2899_v33 = vld [vmem:[%s4932_s5 + $0x118] sm:$0xff]  ;;  %v5306_v58 = vmax.f32 %v5305_v30, 0.0  ;;  %v5308_v42 = vmax.f32 %v5307_v29, 0.0  ;;  %v5325_v30 = vmax.f32 %v4217_v8, 0.0  ;;  %v5326_v29 = vmax.f32 %v4225_v13, 0.0  ;;  %v2865_v8 = vld [vmem:[%s4932_s5 + $0x8] sm:$0xff] }
 0x251   : > { %1509 = vmatpush.msrb.mxu3 %v5286_v40  ;;  %2065 = vmatpush.bf16.msra.mxu0 %v2899_v33  ;;  %v5309_v40 = vld [vmem:[#allocation61_spill] sm:$0xff]  ;;  %v4616_v33 = vld [vmem:[%s4931_s4 + $0x8] sm:$0xff]  ;;  %v2886_v13 = vld [vmem:[%s4932_s5 + $0xb0] sm:$0xff] }
 0x252   : > { %2009 = vmatpush.bf16.msra.mxu2 %v2871_v49  ;;  %v5310_v25 = vmax.f32 %v5309_v40, 0.0  ;;  %v5328_v40 = vmax.f32 %v4247_v63, 0.0  ;;  %v5329_v63 = vmax.f32 %v4292_v20, 0.0  ;;  %v2884_v20 = vld [vmem:[%s4932_s5 + $0xa0] sm:$0xff] }
 0x253   : > { %1510 = vmatpush.msrb.mxu3 %v5288_v15  ;;  %v5311_v15 = vld [vmem:[#allocation63_spill] sm:$0xff] }
 0x254   : > { %v5312_v47 = vmax.f32 %v5311_v15, 0.0  ;;  %v1316_v15 = vpop.f32.mrf.mxu2 }
 0x255   : > { %1511 = vmatpush.msrb.mxu3 %v5290_v23  ;;  %v2869_v23 = vld [vmem:[%s4932_s5 + $0x28] sm:$0xff] }
 0x257   : > { %1512 = vmatpush.msrb.mxu3 %v5292_v11  ;;  %v5314_v11 = vmax.f32 %v5313_v4, 0.0 }
 0x259   : > { %1513 = vmatpush.msrb.mxu3 %v5294_v37  ;;  %v5316_v37 = vmax.f32 %v5315_v12, 0.0 }
 0x25b   : > { %1514 = vmatpush.msrb.mxu3 %v5296_v5  ;;  %v5318_v5 = vmax.f32 %v5317_v57, 0.0 }
 0x25c   : > { %2619 = vmatmul.msk.f32.vlgmr.msrb.gmra.mxu3 %vm1275_vm1, %v3980_v27  ;;  %v2870_v27 = vld [vmem:[%s4932_s5 + $0x30] sm:$0xff] }
 0x25d   : > { %1546 = vmatpush.msra.mxu3 %v5298_v32  ;;  %2010 = vmatpush.bf16.msra.mxu2 %v2870_v27  ;;  %v5319_v32 = vld [vmem:[#allocation19_spill] sm:$0xff]  ;;  %v5327_v27 = vmax.f32 %v4236_v48, 0.0  ;;  %v2864_v48 = vld [vmem:[%s4932_s5] sm:$0xff] }
 0x25e   : > { %v5320_v34 = vmax.f32 %v5319_v32, 0.0 }
 0x25f   : > { %1547 = vmatpush.msra.mxu3 %v5300_v21  ;;  %v5321_v21 = vld [vmem:[#allocation16_spill] sm:$0xff] }
 0x260   : > { %v5322_v60 = vmax.f32 %v5321_v21, 0.0 }
 0x261   : > { %1548 = vmatpush.msra.mxu3 %v5302_v3  ;;  %2011 = vmatpush.bf16.msra.mxu2 %v2869_v23  ;;  %v2898_v3 = vld [vmem:[%s4932_s5 + $0x110] sm:$0xff]  ;;  %v2895_v23 = vld [vmem:[%s4932_s5 + $0xf8] sm:$0xff] }
 0x262   : > { %2066 = vmatpush.bf16.msra.mxu0 %v2898_v3 }
 0x263   : > { %1549 = vmatpush.msra.mxu3 %v5304_v54  ;;  %v5323_v54 = vld [vmem:[#allocation14_spill] sm:$0xff] }
 0x264   : > { %v5324_v49 = vmax.f32 %v5323_v54, 0.0 }
 0x265   : > { %1550 = vmatpush.msra.mxu3 %v5306_v58  ;;  %2012 = vmatpush.bf16.msra.mxu2 %v2868_v41  ;;  %v2866_v58 = vld [vmem:[%s4932_s5 + $0x10] sm:$0xff] }
 0x266   : > { %2067 = vmatpush.bf16.msra.mxu0 %v2897_v56 }
 0x267   : > { %1551 = vmatpush.msra.mxu3 %v5308_v42  ;;  %v2887_v42 = vld [vmem:[%s4932_s5 + $0xb8] sm:$0xff] }
 0x268   : > { %2035 = vmatpush.bf16.msrb.mxu1 %v2887_v42 }
 0x269   : > { %1552 = vmatpush.msra.mxu3 %v5310_v25  ;;  %2013 = vmatpush.bf16.msra.mxu2 %v2867_v31  ;;  %v1296_v25 = vpop.f32.mrf.mxu1 }
 0x26a   : > { %2068 = vmatpush.bf16.msra.mxu0 %v2896_v17  ;;  %v2090_v17 = vld [vmem:[%s4933_s6 + $0x60] sm:$0xf] }
 0x26b   : > { %1553 = vmatpush.msra.mxu3 %v5312_v47  ;;  %v1317_v47 = vadd.f32 %v1316_v15, %v1296_v25 }
 0x26c   : > { %2036 = vmatpush.bf16.msrb.mxu1 %v2886_v13 }
 0x26d   : > { %1554 = vmatpush.msra.mxu3 %v5314_v11  ;;  %2014 = vmatpush.bf16.msra.mxu2 %v2866_v58  ;;  %v1684_v4 = vpack.c.bf16 %v1317_v47, %v1317_v47  ;;  %v2089_v47 = vld [vmem:[%s4933_s6 + $0x58] sm:$0xff] }
 0x26e   : > { %2620 = vmatmul.msk.f32.vlgmr.msra.gmra.mxu3 %vm1275_vm1, %v4616_v33 }
 0x26f   : > { %1586 = vmatpush.msrb.mxu3 %v5316_v37 }
 0x270   : > { %2037 = vmatpush.bf16.msrb.mxu1 %v2885_v55 }
 0x271   : > { %1587 = vmatpush.msrb.mxu3 %v5318_v5  ;;  %2015 = vmatpush.bf16.msra.mxu2 %v2865_v8 }
 0x273   : > { %1588 = vmatpush.msrb.mxu3 %v5320_v34 }
 0x274   : > { %2038 = vmatpush.bf16.msrb.mxu1 %v2884_v20 }
 0x275   : > { %1589 = vmatpush.msrb.mxu3 %v5322_v60  ;;  %2016 = vmatpush.bf16.msra.mxu2 %v2864_v48 }
 0x277   : > { %1590 = vmatpush.msrb.mxu3 %v5324_v49 }
 0x278   : > { %2017 = vmatmul.bf16.vlgmr.msra.gmra.mxu2 %v1684_v4  ;;  %2039 = vmatpush.bf16.msrb.mxu1 %v2883_v44 }
 0x279   : > { %1591 = vmatpush.msrb.mxu3 %v5325_v30  ;;  %2048 = vmatpush.bf16.msrb.mxu2 %v2895_v23  ;;  %v2128_v23 = vunpack.c.l.b16 %v2089_v47 }
 0x27b   : > { %1592 = vmatpush.msrb.mxu3 %v5326_v29 }
 0x27d   : > { %1593 = vmatpush.msrb.mxu3 %v5327_v27 }
 0x27f   : > { %1594 = vmatpush.msrb.mxu3 %v5328_v40 }
 0x280   : > { %2621 = vmatmul.msk.f32.vlgmr.msrb.gmra.mxu3 %vm1275_vm1, %v4616_v33 }
 0x281   : > { %1626 = vmatpush.msra.mxu3 %v1021_v1  ;;  %v5330_v1 = vmax.f32 %v4265_v9, 0.0  ;;  %v2894_v9 = vld [vmem:[%s4932_s5 + $0xf0] sm:$0xff] }
 0x282   : > { %2049 = vmatpush.bf16.msrb.mxu2 %v2894_v9  ;;  %v2143_v9 = vpack.c.b16 %v2128_v23, %v2128_v23 }
 0x283   : > { %1627 = vmatpush.msra.mxu3 %v5329_v63  ;;  %v2088_v63 = vld [vmem:[%s4933_s6 + $0x50] sm:$0xff] }
 0x284   : > { %v2126_v55 = vunpack.c.l.b16 %v2088_v63  ;;  %v2168_v56 = vsel %vm2160_vm2, %v2143_v9, 0 }
 0x285   : > { %1628 = vmatpush.msra.mxu3 %v5330_v1  ;;  %v2127_v1 = vunpack.c.h.b16 %v2088_v63 }
 0x286   : > { %2050 = vmatpush.bf16.msrb.mxu2 %v2893_v45  ;;  %v2141_v4 = vpack.c.b16 %v2126_v55, %v2126_v55 }
 0x287   : > { %1629 = vmatpush.msra.mxu3 %v1006_v0  ;;  %v1336_v0 = vpop.f32.mrf.mxu3  ;;  %v2142_v20 = vpack.c.b16 %v2127_v1, %v2127_v1 }
 0x288   : > { %v2162_v44 = vsel %vm2160_vm2, %v2141_v4, 0 }
 0x289   : > { %1630 = vmatpush.msra.mxu3 %v1001_v22  ;;  %v2882_v22 = vld [vmem:[%s4932_s5 + $0x90] sm:$0xff]  ;;  %v2165_v45 = vsel %vm2160_vm2, %v2142_v20, 0 }
 0x28a   : > { %2040 = vmatpush.bf16.msrb.mxu1 %v2882_v22  ;;  %2051 = vmatpush.bf16.msrb.mxu2 %v2892_v24  ;;  %v2911_v22 = vld [vmem:[%s4933_s6 + $0x38] sm:$0xf0]  ;;  %v2909_v24 = vld [vmem:[%s4933_s6 + $0x2c] sm:$0xf] }
 0x28b   : > { %1631 = vmatpush.msra.mxu3 %v996_v10  ;;  %v1356_v10 = vpop.f32.mrf.mxu1 }
 0x28c   : > { %v1357_v11 = vadd.f32 %v1356_v10, %v1336_v0  ;;  %v2806_v0 = vld [vmem:[%s4933_s6 + $0x28] sm:$0xf]  ;;  %v2814_v10 = vld [vmem:[%s4933_s6 + $0x30] sm:$0xf] }
 0x28d   : > { %1632 = vmatpush.msra.mxu3 %v991_v28 }
 0x28e   : > { %2041 = vmatpush.bf16.msrb.mxu1 %v2881_v53  ;;  %2052 = vmatpush.bf16.msrb.mxu2 %v2891_v19  ;;  %v1685_v12 = vpack.c.bf16 %v1357_v11, %v1357_v11  ;;  %v2807_v53 = vor.u32 %v2911_v22, %v2806_v0  ;;  %v2808_v19 = vld [vmem:[%s4933_s6 + $0x3c] sm:$0xf0]  ;;  %v2913_v11 = vld [vmem:[%s4933_s6 + $0x48] sm:$0xf0] }
 0x28f   : > { %1633 = vmatpush.msra.mxu3 %v986_v43  ;;  %v1396_v28 = vpop.f32.mrf.mxu3  ;;  %v1376_v43 = vpop.f32.mrf.mxu2 }
 0x290   : > { %v1397_v51 = vadd.f32 %v1396_v28, %v1376_v43  ;;  %v2912_v28 = vld [vmem:[%s4933_s6 + $0x40] sm:$0xf0] }
 0x291   : > { %1634 = vmatpush.msra.mxu3 %v981_v46  ;;  %v2880_v46 = vld [vmem:[%s4932_s5 + $0x80] sm:$0xff] }
 0x292   : > { %2622 = vmatmul.msk.f32.vlgmr.msra.gmra.mxu3 %vm1275_vm1, %v4616_v33  ;;  %2042 = vmatpush.bf16.msrb.mxu1 %v2880_v46  ;;  %v1686_v39 = vpack.c.bf16 %v1397_v51, %v1397_v51  ;;  %v2811_v46 = vor.u32 %v2909_v24, %v2808_v19  ;;  %v2786_v51 = vld [vmem:[%s4933_s6] sm:$0xf] }
 0x293   : > { %1666 = vmatpush.msrb.mxu3 %v1022_v61  ;;  %2053 = vmatpush.bf16.msrb.mxu2 %v2890_v26  ;;  %v1416_v61 = vpop.f32.mrf.mxu1  ;;  %v2815_v26 = vor.u32 %v2912_v28, %v2814_v10 }
 0x295   : > { %1667 = vmatpush.msrb.mxu3 %v1017_v35  ;;  %2043 = vmatmul.bf16.vlgmr.msrb.gmra.mxu1 %v1686_v39  ;;  %v2879_v35 = vld [vmem:[%s4932_s5 + $0x78] sm:$0xff]  ;;  %v2906_v39 = vld [vmem:[%s4933_s6 + $0x10] sm:$0xf0] }
 0x296   : > { %2194 = vmatpush.bf16.msra.mxu1 %v2165_v45 }
 0x297   : > { %1668 = vmatpush.msrb.mxu3 %v1012_v50  ;;  %2054 = vmatpush.bf16.msrb.mxu2 %v2889_v7  ;;  %v1436_v18 = vpop.f32.mrf.mxu3  ;;  %v1456_v37 = vpop.f32.mrf.mxu2  ;;  %v2904_v7 = vld [vmem:[%s4933_s6 + $0x4] sm:$0xf] }
 0x298   : > { %v1437_v50 = vadd.f32 %v1436_v18, %v1416_v61  ;;  %v2788_v61 = vld [vmem:[%s4933_s6 + $0x14] sm:$0xf0]  ;;  %v2794_v18 = vld [vmem:[%s4933_s6 + $0x8] sm:$0xf] }
 0x299   : > { %1669 = vmatpush.msrb.mxu3 %v1007_v6 }
 0x29a   : > { %v1687_v6 = vpack.c.bf16 %v1437_v50, %v1437_v50  ;;  %2195 = vmatpush.bf16.msra.mxu1 %v2811_v46  ;;  %v2907_v50 = vld [vmem:[%s4933_s6 + $0x18] sm:$0xf0] }
 0x29b   : > { %1670 = vmatpush.msrb.mxu3 %v1002_v16  ;;  %v2878_v16 = vld [vmem:[%s4932_s5 + $0x70] sm:$0xff]  ;;  %2055 = vmatpush.bf16.msrb.mxu2 %v2888_v36  ;;  %v1496_v41 = vpop.f32.mrf.mxu1  ;;  %v2791_v36 = vor.u32 %v2904_v7, %v2788_v61 }
 0x29d   : > { %1671 = vmatpush.msrb.mxu3 %v997_v2  ;;  %v2876_v2 = vld [vmem:[%s4932_s5 + $0x60] sm:$0xff] }
 0x29e   : > { %2056 = vmatmul.bf16.vlgmr.msrb.gmra.mxu2 %v1687_v6  ;;  %v2795_v6 = vor.u32 %v2907_v50, %v2794_v18  ;;  %2196 = vmatpush.bf16.msra.mxu1 %v2791_v36 }
 0x29f   : > { %1672 = vmatpush.msrb.mxu3 %v992_v38  ;;  %v2874_v38 = vld [vmem:[%s4932_s5 + $0x50] sm:$0xff]  ;;  %2207 = vmatpush.bf16.msra.mxu2 %v2168_v56 }
 0x2a1   : > { %1673 = vmatpush.msrb.mxu3 %v987_v14  ;;  %v2873_v14 = vld [vmem:[%s4932_s5 + $0x48] sm:$0xff] }
 0x2a3   : > { %1674 = vmatpush.msrb.mxu3 %v982_v59  ;;  %v2872_v59 = vld [vmem:[%s4932_s5 + $0x40] sm:$0xff]  ;;  %v1576_v54 = vpop.f32.mrf.mxu1  ;;  %2208 = vmatpush.bf16.msra.mxu2 %v2815_v26 }
 0x2a4   : > { %2623 = vmatmul.msk.f32.vlgmr.msrb.gmra.mxu3 %vm1275_vm1, %v4616_v33 }
 0x2a5   : > { %2022 = vmatpush.bf16.msra.mxu3 %v2879_v35  ;;  %v2787_v35 = vor.u32 %v2906_v39, %v2786_v51 }
 0x2a7   : > { %2209 = vmatpush.bf16.msra.mxu2 %v2795_v6 }
 0x2a9   : > { %2023 = vmatpush.bf16.msra.mxu3 %v2878_v16  ;;  %v2129_v16 = vunpack.c.h.b16 %v2089_v47 }
 0x2ab   : > { %v1656_v29 = vpop.f32.mrf.mxu1 }
 0x2ad   : > { %2024 = vmatpush.bf16.msra.mxu3 %v2877_v52  ;;  %v2130_v52 = vunpack.c.l.b16 %v2090_v17 }
 0x2b1   : > { %2025 = vmatpush.bf16.msra.mxu3 %v2876_v2  ;;  %v2910_v2 = vld [vmem:[%s4933_s6 + $0x34] sm:$0xf] }
 0x2b3   : > { %v1536_v21 = vpop.f32.mrf.mxu2 }
 0x2b5   : > { %2026 = vmatpush.bf16.msra.mxu3 %v2875_v62  ;;  %v2144_v62 = vpack.c.b16 %v2129_v16, %v2129_v16 }
 0x2b9   : > { %2027 = vmatpush.bf16.msra.mxu3 %v2874_v38  ;;  %v2145_v38 = vpack.c.b16 %v2130_v52, %v2130_v52 }
 0x2bd   : > { %2028 = vmatpush.bf16.msra.mxu3 %v2873_v14  ;;  %v2816_v14 = vld [vmem:[%s4933_s6 + $0x44] sm:$0xf0] }
 0x2c1   : > { %2029 = vmatpush.bf16.msra.mxu3 %v2872_v59  ;;  %v2822_v59 = vld [vmem:[%s4933_s6 + $0x38] sm:$0xf] }
 0x2c4   : > { %2030 = vmatmul.bf16.vlgmr.msra.gmra.mxu3 %v1685_v12  ;;  %v2171_v12 = vsel %vm2160_vm2, %v2144_v62, 0 }
 0x2c5   : > { %2181 = vmatpush.bf16.msrb.mxu3 %v2162_v44 }
 0x2c9   : > { %2182 = vmatpush.bf16.msrb.mxu3 %v2807_v53 }
 0x2cd   : > { %v1476_v33 = vpop.f32.mrf.mxu3  ;;  %2183 = vmatpush.bf16.msrb.mxu3 %v2787_v35 }
 0x2ce   : > { %v1477_v57 = vadd.f32 %v1476_v33, %v1456_v37  ;;  %v2174_v37 = vsel %vm2160_vm2, %v2145_v38, 0  ;;  %v2819_v33 = vor.u32 %v2910_v2, %v2816_v14 }
 0x2cf   : > { %2233 = vmatpush.bf16.msrb.mxu1 %v2174_v37 }
 0x2d0   : > { %v1688_v5 = vpack.c.bf16 %v1477_v57, %v1477_v57  ;;  %v2823_v57 = vor.u32 %v2913_v11, %v2822_v59 }
 0x2d1   : > { %2220 = vmatpush.bf16.msra.mxu3 %v2171_v12 }
 0x2d2   : > { %2069 = vmatmul.bf16.vlgmr.msra.gmra.mxu0 %v1688_v5  ;;  %v2905_v5 = vld [vmem:[%s4933_s6 + $0xc] sm:$0xf] }
 0x2d3   : > { %v1616_v31 = vpop.f32.mrf.mxu2  ;;  %2234 = vmatpush.bf16.msrb.mxu1 %v2823_v57 }
 0x2d5   : > { %2221 = vmatpush.bf16.msra.mxu3 %v2819_v33 }
 0x2df   : > { %v1516_v32 = vpop.f32.mrf.mxu3 }
 0x2e0   : > { %v4774_v34 = vadd.f32 %v1516_v32, %v1496_v41  ;;  %v2796_v41 = vld [vmem:[%s4933_s6 + $0x1c] sm:$0xf0]  ;;  %v2802_v32 = vld [vmem:[%s4933_s6 + $0x10] sm:$0xf] }
 0x2f1   : > { %v1556_v60 = vpop.f32.mrf.mxu3 }
 0x2f2   : > { %v4776_v3 = vadd.f32 %v1556_v60, %v1536_v21  ;;  %v2908_v21 = vld [vmem:[%s4933_s6 + $0x20] sm:$0xf0]  ;;  %v2799_v60 = vor.u32 %v2905_v5, %v2796_v41 }
 0x2f4   : > { %2222 = vmatpush.bf16.msra.mxu3 %v2799_v60  ;;  %v1680_v17 = vmul.f32 0.04, %v4776_v3  ;;  %v1679_v60 = vmul.f32 0.04, %v4774_v34 }
 0x2fb   : > { %v4780_v58 = vpop.f32.mrf.mxu2 }
 0x303   : > { %v1596_v49 = vpop.f32.mrf.mxu3  ;;  %v2020_v42 = vpop.f32.mrf.mxu2 }
 0x304   : > { %v4778_v30 = vadd.f32 %v1596_v49, %v1576_v54 }
 0x312   : > { %v4784_v40 = vpop.f32.mrf.mxu1 }
 0x315   : > { %v1636_v27 = vpop.f32.mrf.mxu3 }
 0x316   : > { %v4782_v8 = vadd.f32 %v1636_v27, %v1616_v31  ;;  %v2803_v31 = vor.u32 %v2908_v21, %v2802_v32 }
 0x318   : > { %2235 = vmatpush.bf16.msrb.mxu1 %v2803_v31 }
 0x31a   : > { %v2046_v13 = vpop.f32.mrf.mxu1 }
 0x321   : > { %v4788_v15 = vpop.f32.mrf.mxu2 }
 0x327   : > { %v1676_v48 = vpop.f32.mrf.mxu3 }
 0x328   : > { %v4786_v25 = vadd.f32 %v1676_v48, %v1656_v29 }
 0x329   : > { %v2059_v43 = vpop.f32.mrf.mxu2 }
 0x347   : > { %v2031_v54 = vpop.f32.mrf.mxu3 }
 0x348   : > { %v2032_v49 = vadd.f32 %v2031_v54, %v4780_v58 }
 0x34a   : > { %v2045_v29 = vadd.f32 %v4784_v40, %v2032_v49 }
 0x34c   : > { %v2058_v27 = vadd.f32 %v4788_v15, %v2045_v29 }
 0x34f   : > { %v2033_v42 = vpop.f32.mrf.mxu3  ;;  %v2070_v13 = vpop.f32.mrf.mxu0 }
 0x350   : > { %v2071_v48 = vadd.f32 %v2070_v13, %v2058_v27  ;;  %v1681_v42 = vmul.f32 0.04, %v4778_v30 }
 0x352   : > { %v2074_v63 = vmax.f32 %v2071_v48, 0.0 }
 0x354   : > { %v2075_v47 = vpack.c.bf16 %v2074_v63, %v2074_v63 }
 0x356   : > { %2824 = vmatmul.msk.bf16.vlgmr.msrb.gmra.mxu3 %vm2156_vm3, %v2075_v47  ;;  %2825 = vmatmul.msk.bf16.vlgmr.msra.gmra.mxu1 %vm2156_vm3, %v2075_v47 }
 0x357   : > { %2826 = vmatmul.msk.bf16.vlgmr.msra.gmra.mxu2 %vm2156_vm3, %v2075_v47  ;;  %v2072_v55 = vpop.f32.mrf.mxu0 }
 0x366   : > { %2827 = vmatmul.msk.bf16.vlgmr.msra.gmra.mxu3 %vm2156_vm3, %v2075_v47  ;;  %2828 = vmatmul.msk.bf16.vlgmr.msrb.gmra.mxu1 %vm2156_vm3, %v2075_v47 }
 0x3d3   : > { %v2198_v1 = vpop.f32.mrf.mxu1 }
 0x3d4   : > { %v2830_v23 = vmul.f32 -1.442695, %v2198_v1 }
 0x3d6   : > { %2968 = vpow2.f32 %v2830_v23 }
 0x3d9   : > { %v2185_v58 = vpop.f32.mrf.mxu3 }
 0x3da   : > { %v2829_v4 = vmul.f32 -1.442695, %v2185_v58  ;;  %v2211_v40 = vpop.f32.mrf.mxu2 }
 0x3db   : > { %v2831_v20 = vmul.f32 -1.442695, %v2211_v40  ;;  %v2200_v9 = vpop.f32.mrf.mxu1 }
 0x3dc   : > { %v2969_v15 = vpop.eup %2968  ;;  %2970 = vpow2.f32 %v2829_v4 }
 0x3dd   : > { %v2257_v44 = vadd.f32 1.0, %v2969_v15  ;;  %2972 = vpow2.f32 %v2831_v20 }
 0x3df   : > { %2974 = vrcp.f32 %v2257_v44  ;;  %v2287_v26 = vand.u32 2147483648, %v2257_v44  ;;  %v2285_v7 = vand.u32 2147483647, %v2257_v44  ;;  %vm2281_vm5 = vweird.f32 %v2257_v44 }
 0x3e1   : > { %v2187_v45 = vpop.f32.mrf.mxu3  ;;  %v2288_v16 = vor.u32 1.1754944e-38, %v2287_v26  ;;  %vm2286_vm7 = vcmp.eq.f32.partialorder %v2285_v7, 8.507059e+37 }
 0x3e2   : > { %v2971_v56 = vpop.eup %2970  ;;  %v2213_v0 = vpop.f32.mrf.mxu2  ;;  %v1683_v45 = vmul.f32 0.04, %v4786_v25 }
 0x3e3   : > { %v2973_v22 = vpop.eup %2972  ;;  %v2256_v24 = vadd.f32 1.0, %v2971_v56  ;;  %v2237_v53 = vpop.f32.mrf.mxu1 }
 0x3e4   : > { %v4867_v19 = vadd.f32 1.0, %v2973_v22  ;;  %v2833_v10 = vmul.f32 -1.442695, %v2237_v53 }
 0x3e5   : > { %v2975_v28 = vpop.eup %2974  ;;  %2976 = vrcp.f32 %v2256_v24  ;;  %v2270_v14 = vand.u32 2147483647, %v2256_v24  ;;  %v2272_v11 = vand.u32 2147483648, %v2256_v24  ;;  %vm2266_vm10 = vweird.f32 %v2256_v24 }
 0x3e6   : > { %v2277_v43 = vmul.f32 %v2975_v28, %v2257_v44  ;;  %2978 = vrcp.f32 %v4867_v19  ;;  %vm2282_vm4 = vweird.f32 %v2975_v28  ;;  %v2302_v5 = vand.u32 2147483648, %v4867_v19 }
 0x3e7   : > { %2980 = vpow2.f32 %v2833_v10  ;;  %vm2283_vm6 = vmor %vm2281_vm5, %vm2282_vm4  ;;  %v2300_v41 = vand.u32 2147483647, %v4867_v19  ;;  %v2273_v54 = vor.u32 1.1754944e-38, %v2272_v11  ;;  %vm2296_vm12 = vweird.f32 %v4867_v19 }
 0x3e8   : > { %v2278_v46 = vsub.f32 1.0, %v2277_v43  ;;  %vm2271_vm13 = vcmp.eq.f32.partialorder %v2270_v14, 8.507059e+37  ;;  %v2303_v34 = vor.u32 1.1754944e-38, %v2302_v5  ;;  %v1682_v43 = vmul.f32 0.04, %v4782_v8 }
 0x3e9   : > { %v2224_v51 = vpop.f32.mrf.mxu3  ;;  %vm2301_vm15 = vcmp.eq.f32.partialorder %v2300_v41, 8.507059e+37 }
 0x3ea   : > { %v2279_v39 = vmul.f32 %v2975_v28, %v2278_v46  ;;  %v2832_v35 = vmul.f32 -1.442695, %v2224_v51 }
 0x3eb   : > { %v2977_v61 = vpop.eup %2976  ;;  %v2239_v18 = vpop.f32.mrf.mxu1 }
 0x3ec   : > { %v2979_v50 = vpop.eup %2978  ;;  %v2280_v36 = vadd.f32 %v2975_v28, %v2279_v39  ;;  %v2262_v6 = vmul.f32 %v2977_v61, %v2256_v24  ;;  %2982 = vpow2.f32 %v2832_v35  ;;  %vm2267_vm8 = vweird.f32 %v2977_v61 }
 0x3ed   : > { %v2292_v52 = vmul.f32 %v2979_v50, %v4867_v19  ;;  %v2981_v2 = vpop.eup %2980  ;;  %vm2297_vm9 = vweird.f32 %v2979_v50  ;;  %vm2268_vm11 = vmor %vm2266_vm10, %vm2267_vm8 }
 0x3ee   : > { %v2284_v62 = vsel %vm2283_vm6, %v2975_v28, %v2280_v36  ;;  %v2263_v38 = vsub.f32 1.0, %v2262_v6  ;;  %v2260_v37 = vadd.f32 1.0, %v2981_v2  ;;  %vm2298_vm14 = vmor %vm2296_vm12, %vm2297_vm9 }
 0x3ef   : > { %v2289_v59 = vsel %vm2286_vm7, %v2288_v16, %v2284_v62  ;;  %v2293_v12 = vsub.f32 1.0, %v2292_v52 }
 0x3f0   : > { %v2337_v33 = vmul.f32 %v2289_v59, %v1680_v17  ;;  %v2264_v57 = vmul.f32 %v2977_v61, %v2263_v38  ;;  %2984 = vrcp.f32 %v2260_v37  ;;  %v2330_v30 = vand.u32 2147483647, %v2260_v37 }
 0x3f1   : > { %v2294_v3 = vmul.f32 %v2979_v50, %v2293_v12  ;;  %v2226_v32 = vpop.f32.mrf.mxu3  ;;  %v2332_v40 = vand.u32 2147483648, %v2260_v37  ;;  %vm2326_vm1 = vweird.f32 %v2260_v37 }
 0x3f2   : > { %v2983_v21 = vpop.eup %2982  ;;  %v2265_v31 = vadd.f32 %v2977_v61, %v2264_v57  ;;  %2342 = vst [vmem:[%s4881_s18 + $0x8] sm:$0xff] %v2337_v33  ;;  %vm2331_vm3 = vcmp.eq.f32.partialorder %v2330_v30, 8.507059e+37 }
 0x3f3   : > { %v2295_v49 = vadd.f32 %v2979_v50, %v2294_v3  ;;  %v2259_v29 = vadd.f32 1.0, %v2983_v21  ;;  %v2333_v56 = vor.u32 1.1754944e-38, %v2332_v40 }
 0x3f4   : > { %v2269_v27 = vsel %vm2268_vm11, %v2977_v61, %v2265_v31 }
 0x3f5   : > { %v2274_v13 = vsel %vm2271_vm13, %v2273_v54, %v2269_v27  ;;  %v2299_v48 = vsel %vm2298_vm14, %v2979_v50, %v2295_v49  ;;  %2986 = vrcp.f32 %v2259_v29  ;;  %v2317_v0 = vand.u32 2147483648, %v2259_v29 }
 0x3f6   : > { %v2336_v63 = vmul.f32 %v2274_v13, %v1679_v60  ;;  %v2304_v47 = vsel %vm2301_vm15, %v2303_v34, %v2299_v48  ;;  %v2985_v55 = vpop.eup %2984  ;;  %v2315_v53 = vand.u32 2147483647, %v2259_v29  ;;  %vm2311_vm5 = vweird.f32 %v2259_v29 }
 0x3f7   : > { %v2338_v1 = vmul.f32 %v2304_v47, %v1681_v42  ;;  %v2322_v23 = vmul.f32 %v2985_v55, %v2260_v37  ;;  %vm2327_vm0 = vweird.f32 %v2985_v55  ;;  %v2318_v25 = vor.u32 1.1754944e-38, %v2317_v0 }
 0x3f8   : > { %2341 = vst [vmem:[%s4881_s18] sm:$0xff] %v2336_v63  ;;  %vm2328_vm2 = vmor %vm2326_vm1, %vm2327_vm0  ;;  %vm2316_vm7 = vcmp.eq.f32.partialorder %v2315_v53, 8.507059e+37 }
 0x3f9   : > { %2343 = vst [vmem:[%s4881_s18 + $0x10] sm:$0xff] %v2338_v1  ;;  %v2323_v58 = vsub.f32 1.0, %v2322_v23 }
 0x3fb   : > { %v2987_v4 = vpop.eup %2986  ;;  %v2324_v20 = vmul.f32 %v2985_v55, %v2323_v58 }
 0x3fc   : > { %v2307_v9 = vmul.f32 %v2987_v4, %v2259_v29  ;;  %vm2312_vm4 = vweird.f32 %v2987_v4 }
 0x3fd   : > { %v2325_v15 = vadd.f32 %v2985_v55, %v2324_v20  ;;  %vm2313_vm6 = vmor %vm2311_vm5, %vm2312_vm4 }
 0x3fe   : > { %v2308_v44 = vsub.f32 1.0, %v2307_v9 }
 0x3ff   : > { %v2329_v22 = vsel %vm2328_vm2, %v2985_v55, %v2325_v15 }
 0x400   : > { %v2309_v24 = vmul.f32 %v2987_v4, %v2308_v44  ;;  %v2334_v19 = vsel %vm2331_vm3, %v2333_v56, %v2329_v22 }
 0x401   : > { %v2340_v10 = vmul.f32 %v2334_v19, %v1683_v45 }
 0x402   : > { %v2310_v28 = vadd.f32 %v2987_v4, %v2309_v24 }
 0x403   : > { %2345 = vst [vmem:[%s4881_s18 + $0x20] sm:$0xff] %v2340_v10 }
 0x404   : > { %v2314_v46 = vsel %vm2313_vm6, %v2987_v4, %v2310_v28 }
 0x405   : > { %v2319_v26 = vsel %vm2316_vm7, %v2318_v25, %v2314_v46 }
 0x406   : > { %v2339_v51 = vmul.f32 %v2319_v26, %v1682_v43 }
 0x408   : > { %2344 = vst [vmem:[%s4881_s18 + $0x18] sm:$0xff] %v2339_v51 }
 0x409   : > { %3050 = shalt.err (!%p3047_p8)
}
 0x40a   : > { %2920 = dma.vmem_to_hbm [thread:$0]  (%p3172_p5), %s2361_s28, 640, %s2363_s23, %s2347_s9  }
 0x40b PF: > { %p2932_p9 = scmp.ge.s32.totalorder %s3089_s27, 2  ;;  %s2374_s16 = sand.u32 1, %s3077_s24  }
 0x40c   : > { %s2375_s18 = scalar_lea.sflag [#allocation4], %s2374_s16 }
 0x40d   : > { %p2927_p10 = pnand %p2932_p9, %p3176_p6 }
 0x40f   : > { %p2928_p11 = pneg %p2927_p10 }
 0x411   : > { %3072 = dma.done.wait (%p2928_p11), %s2375_s18, 640  }
 0x412   : > { %3074 = vsyncadd (%p2928_p11), %s2375_s18, 4294966656  ;;  %p18_p12 = scmp.ge.s32.totalorder %s3159_s30, 4   ;;  %s5331_s24 = smov %s3081_s25 }
 0x413   : > { %s5332_s25 = smov %s3085_s26  ;;  %s5333_s26 = smov %s3170_s10 }
 0x414   : > { %s5334_s27 = smov %s3159_s30  ;;  %20 = sbr.rel (!%p18_p12) target bundleno = 4 (0x4), region = 88 }
 0x419   :  { %2381 = vsyncpa [#allocation3], 1 }
 0x41a   :  { %2383 = vsyncpa [#allocation3 + $0x1], 1 }
 0x41b   :  { %2384 = vsyncpa [#allocation4], 1 }
 0x41c   :  { %2386 = vsyncpa [#allocation4 + $0x1], 1 }

</bundles_post_ra>
